<compile_context>
chip_gen: v7x
topology: tpu7x:2x2x1
jax: 0.10.0
libtpu: 0.0.40
codegen_flags: <defaults>
</compile_context>

<pallas_src>
import functools

import jax
import jax.numpy as jnp
from jax import lax
from jax.experimental import pallas as pl
from jax.experimental.pallas import tpu as pltpu


def _round_up(x, m):
    return (x + m - 1) // m * m


# ----------------------------------------------------------------------------
# In-kernel helpers (traced inside the Pallas kernel body).
# ----------------------------------------------------------------------------
def _lane_shift(x, off):
    """out[:, p] = x[:, (p + off) % P] for a static offset (lane rotation)."""
    p_flat = x.shape[1]
    k = off % p_flat
    if k == 0:
        return x
    return jnp.concatenate([x[:, k:], x[:, :k]], axis=1)


def _patches3x3(x, masks, w_img):
    """im2col slab for a 3x3 / stride-1 / pad-1 convolution.

    x:     (Cin, P) with P = N*H*W flattened n-major, (h, w) row-major.
    masks: (9, P) {0,1} floats; masks[t] zeroes positions whose tap (dh, dw)
           falls outside the image, so the circular lane shift never leaks
           pixels across row / image boundaries (this implements pad=1).
    Returns (9*Cin, P); tap order is (kh, kw) row-major, channel minor,
    matching the weight layout produced by the wrapper.
    """
    slabs = []
    t = 0
    for dh in (-1, 0, 1):
        for dw in (-1, 0, 1):
            off = dh * w_img + dw
            if off == 0:
                slabs.append(x)                       # centre tap: always valid
            else:
                slabs.append(_lane_shift(x, off) * masks[t:t + 1, :])
            t += 1
    return jnp.concatenate(slabs, axis=0)


def _bn_relu(y, gamma, beta, eps):
    """Training-mode BatchNorm (batch stats, biased variance) + ReLU.

    y: (Cout, P) with P = N*H*W; gamma/beta: (Cout, 1).
    """
    m = jnp.float32(y.shape[1])
    mean = jnp.sum(y, axis=1, keepdims=True) / m
    d = y - mean
    var = jnp.sum(d * d, axis=1, keepdims=True) / m
    y_hat = d * lax.rsqrt(var + eps)
    return jnp.maximum(y_hat * gamma + beta, 0.0)


def _upsample_block_kernel(xh_ref, xl_ref, w1_ref, w2_ref, m1_ref, m2_ref,
                           r_ref, g1_ref, b1_ref, g2_ref, b2_ref, o_ref,
                           *, wh, wl, n, eps):
    # ---- conv1 (3x3, pad=1, no bias) + BN + ReLU: one im2col matmul --------
    p1 = _patches3x3(xh_ref[...], m1_ref[...], wh)                      # (9*Chp, Ph)
    y1 = jnp.dot(w1_ref[...], p1, preferred_element_type=jnp.float32)  # (Cout, Ph)
    a1 = _bn_relu(y1, g1_ref[...], b1_ref[...], eps)

    # ---- bilinear upsample (align_corners=False) as a single matmul --------
    fr = jnp.dot(a1, r_ref[...], preferred_element_type=jnp.float32)   # (Cout, Pl)

    # ---- channel concat [f_resize, low] + conv_adjust + BN + ReLU ----------
    x2 = jnp.concatenate([fr, xl_ref[...]], axis=0)                    # (Cout+Clp, Pl)
    p2 = _patches3x3(x2, m2_ref[...], wl)                              # (9*(Cout+Clp), Pl)
    y2 = jnp.dot(w2_ref[...], p2, preferred_element_type=jnp.float32)  # (Cout, Pl)
    a2 = _bn_relu(y2, g2_ref[...], b2_ref[...], eps)                   # (Cout, Pl)

    # ---- lane-dense per-image stores into the (N, Cout, Hl*Wl) output ------
    per_img = a2.shape[1] // n
    for i in range(n):
        o_ref[i] = a2[:, i * per_img:(i + 1) * per_img]


# ----------------------------------------------------------------------------
# Wrapper-side constant operators (pure index math / layout plumbing).
# ----------------------------------------------------------------------------
def _tap_masks(n, h, w):
    """(9, N*H*W) {0,1} masks, one per 3x3 tap (dh, dw), row-major tap order."""
    hh = jnp.arange(h)[:, None]
    ww = jnp.arange(w)[None, :]
    rows = []
    for dh in (-1, 0, 1):
        for dw in (-1, 0, 1):
            m = ((hh + dh >= 0) & (hh + dh < h) &
                 (ww + dw >= 0) & (ww + dw < w))
            rows.append(jnp.broadcast_to(m[None], (n, h, w)).reshape(-1))
    return jnp.stack(rows).astype(jnp.float32)


def _interp_matrix(out_size, in_size):
    """1-D linear interpolation weights, PyTorch align_corners=False."""
    i = jnp.arange(out_size, dtype=jnp.float32)
    src = (i + 0.5) * (in_size / out_size) - 0.5
    src = jnp.maximum(src, 0.0)
    i0f = jnp.floor(src)
    frac = src - i0f
    i0 = i0f.astype(jnp.int32)
    i1 = jnp.minimum(i0 + 1, in_size - 1)
    rows = jnp.arange(out_size)
    a = jnp.zeros((out_size, in_size), jnp.float32)
    a = a.at[rows, i0].add(1.0 - frac)
    a = a.at[rows, i1].add(frac)
    return a


def _bilinear_resize_operator(n, hh, wh, hl, wl):
    """(N*Hh*Wh, N*Hl*Wl) operator: flat_out = flat_in @ R == bilinear resize."""
    ah = _interp_matrix(hl, hh)                       # (Hl, Hh)
    aw = _interp_matrix(wl, wh)                       # (Wl, Wh)
    m = jnp.einsum('Hh,Ww->hwHW', ah, aw).reshape(hh * wh, hl * wl)
    # Block-diagonal over the batch (batch is folded into the lane axis).
    # TODO(synk): at large spatial sizes build this separably (A_h then A_w)
    # or tile it; the dense operator scales as (N*Hh*Wh)*(N*Hl*Wl).
    return jnp.kron(jnp.eye(n, dtype=jnp.float32), m)


def upsample_block_forward(high_nchw, low_nchw, w1_oihw, w2_oihw,
                           gamma1, beta1, gamma2, beta2, eps=1e-5):
    """Forward of upsample_block: conv_bn_relu -> bilinear up -> cat -> conv_bn_relu."""
    n, ch, hh, wh = high_nchw.shape
    n2, cl, hl, wl = low_nchw.shape
    assert n == n2
    cout = w1_oihw.shape[0]
    assert w2_oihw.shape[1] == cout + cl

    f32 = jnp.float32
    chp = _round_up(ch, 8)            # pad input channels so every sublane
    clp = _round_up(cl, 8)            # slice/concat in the kernel is aligned
    ph = n * hh * wh
    plow = n * hl * wl

    # layout plumbing (cheap XLA glue): channels-major, flat (N*H*W) lanes
    xh = jnp.transpose(high_nchw, (1, 0, 2, 3)).reshape(ch, ph).astype(f32)
    xh = jnp.pad(xh, ((0, chp - ch), (0, 0)))
    xl = jnp.transpose(low_nchw, (1, 0, 2, 3)).reshape(cl, plow).astype(f32)
    xl = jnp.pad(xl, ((0, clp - cl), (0, 0)))

    # weights -> (Cout, 9*Cin_padded), tap-major / channel-minor
    w1 = jnp.transpose(w1_oihw, (0, 2, 3, 1)).astype(f32)            # (Cout,3,3,Ch)
    w1 = jnp.pad(w1, ((0, 0), (0, 0), (0, 0), (0, chp - ch)))
    w1 = w1.reshape(cout, 9 * chp)
    w2t = jnp.transpose(w2_oihw, (0, 2, 3, 1)).astype(f32)           # (Cout,3,3,Cout+Cl)
    w2a = w2t[..., :cout]                                            # f_resize group
    w2b = jnp.pad(w2t[..., cout:], ((0, 0), (0, 0), (0, 0), (0, clp - cl)))
    w2 = jnp.concatenate([w2a, w2b], axis=-1).reshape(cout, 9 * (cout + clp))

    # constant operators (index math only)
    m1 = _tap_masks(n, hh, wh)                                       # (9, Ph)
    m2 = _tap_masks(n, hl, wl)                                       # (9, Pl)
    r = _bilinear_resize_operator(n, hh, wh, hl, wl)                 # (Ph, Pl)

    g1 = gamma1.reshape(cout, 1).astype(f32)
    b1 = beta1.reshape(cout, 1).astype(f32)
    g2 = gamma2.reshape(cout, 1).astype(f32)
    b2 = beta2.reshape(cout, 1).astype(f32)

    out = pl.pallas_call(
        functools.partial(_upsample_block_kernel, wh=wh, wl=wl, n=n, eps=eps),
        out_shape=jax.ShapeDtypeStruct((n, cout, hl * wl), f32),
        compiler_params=pltpu.CompilerParams(vmem_limit_bytes=32 * 1024 * 1024),
    )(xh, xl, w1, w2, m1, m2, r, g1, b1, g2, b2)

    return out.reshape(n, cout, hl, wl)


if __name__ == "__main__":
    N = 2
    H_CH, L_CH, OUT_CH = 4, 4, 8
    HH = WH = 8          # high-level feature (smaller resolution)
    HL = WL = 16         # low-level feature  (larger resolution)

    key = jax.random.PRNGKey(0)
    k1, k2, k3, k4 = jax.random.split(key, 4)
    high = jax.random.normal(k1, (N, H_CH, HH, WH), jnp.float32)
    low = jax.random.normal(k2, (N, L_CH, HL, WL), jnp.float32)
    w1 = 0.1 * jax.random.normal(k3, (OUT_CH, H_CH, 3, 3), jnp.float32)
    w2 = 0.1 * jax.random.normal(k4, (OUT_CH, OUT_CH + L_CH, 3, 3), jnp.float32)
    # fresh nn.BatchNorm2d defaults: weight (gamma) = 1, bias (beta) = 0
    g1 = jnp.ones((OUT_CH,), jnp.float32)
    b1 = jnp.zeros((OUT_CH,), jnp.float32)
    g2 = jnp.ones((OUT_CH,), jnp.float32)
    b2 = jnp.zeros((OUT_CH,), jnp.float32)

    out = upsample_block_forward(high, low, w1, w2, g1, b1, g2, b2)
    out = jax.block_until_ready(out)

    # ---------------- pure-JAX reference (PyTorch semantics) ----------------
    def conv_bn_relu_ref(x, w, gamma, beta, eps=1e-5):
        y = lax.conv_general_dilated(
            x, w, window_strides=(1, 1), padding=((1, 1), (1, 1)),
            dimension_numbers=("NCHW", "OIHW", "NCHW"))
        mean = y.mean(axis=(0, 2, 3), keepdims=True)
        var = y.var(axis=(0, 2, 3), keepdims=True)       # biased, like torch BN
        y_hat = (y - mean) / jnp.sqrt(var + eps)
        y_hat = y_hat * gamma[None, :, None, None] + beta[None, :, None, None]
        return jnp.maximum(y_hat, 0.0)

    f1 = conv_bn_relu_ref(high, w1, g1, b1)
    f_resize = jax.image.resize(f1, (N, OUT_CH, HL, WL), method="bilinear")
    fusion = jnp.concatenate([f_resize, low], axis=1)
    ref = conv_bn_relu_ref(fusion, w2, g2, b2)

    assert out.shape == ref.shape == (N, OUT_CH, HL, WL)
    max_err = float(jnp.max(jnp.abs(out - ref)))
    assert jnp.allclose(out, ref, rtol=5e-3, atol=5e-3), max_err
    print("KERNEL_OK")
</pallas_src>

<mosaic_0001>
module attributes {stable_mosaic.version = 11 : i64} {
  func.func @_upsample_block_kernel(%arg0: memref<8x128xf32, #tpu.memory_space<vmem>>, %arg1: memref<8x512xf32, #tpu.memory_space<vmem>>, %arg2: memref<8x72xf32, #tpu.memory_space<vmem>>, %arg3: memref<8x144xf32, #tpu.memory_space<vmem>>, %arg4: memref<9x128xf32, #tpu.memory_space<vmem>>, %arg5: memref<9x512xf32, #tpu.memory_space<vmem>>, %arg6: memref<128x512xf32, #tpu.memory_space<vmem>>, %arg7: memref<8x1xf32, #tpu.memory_space<vmem>>, %arg8: memref<8x1xf32, #tpu.memory_space<vmem>>, %arg9: memref<8x1xf32, #tpu.memory_space<vmem>>, %arg10: memref<8x1xf32, #tpu.memory_space<vmem>>, %arg11: memref<2x8x256xf32, #tpu.memory_space<vmem>>) attributes {dimension_semantics = [], scalar_prefetch = 0 : i64, scratch_operands = 0 : i64, tpu.core_type = #tpu.core_type<tc>} {
    %c0 = arith.constant 0 : index
    %c0_0 = arith.constant 0 : index
    %0 = vector.load %arg0[%c0, %c0_0] : memref<8x128xf32, #tpu.memory_space<vmem>>, vector<8x128xf32>
    %c0_1 = arith.constant 0 : index
    %c0_2 = arith.constant 0 : index
    %1 = vector.load %arg4[%c0_1, %c0_2] : memref<9x128xf32, #tpu.memory_space<vmem>>, vector<9x128xf32>
    %2 = vector.extract_strided_slice %0 {offsets = [0, 119], sizes = [8, 9], strides = [1, 1]} : vector<8x128xf32> to vector<8x9xf32>
    %3 = vector.extract_strided_slice %0 {offsets = [0, 0], sizes = [8, 119], strides = [1, 1]} : vector<8x128xf32> to vector<8x119xf32>
    %4 = tpu.concatenate %2, %3 in 1 : vector<8x9xf32>, vector<8x119xf32> -> vector<8x128xf32>
    %5 = vector.extract_strided_slice %1 {offsets = [0, 0], sizes = [1, 128], strides = [1, 1]} : vector<9x128xf32> to vector<1x128xf32>
    %6 = vector.broadcast %5 : vector<1x128xf32> to vector<8x128xf32>
    %7 = arith.mulf %4, %6 : vector<8x128xf32>
    %8 = vector.extract_strided_slice %0 {offsets = [0, 120], sizes = [8, 8], strides = [1, 1]} : vector<8x128xf32> to vector<8x8xf32>
    %9 = vector.extract_strided_slice %0 {offsets = [0, 0], sizes = [8, 120], strides = [1, 1]} : vector<8x128xf32> to vector<8x120xf32>
    %10 = tpu.concatenate %8, %9 in 1 : vector<8x8xf32>, vector<8x120xf32> -> vector<8x128xf32>
    %11 = vector.extract_strided_slice %1 {offsets = [1, 0], sizes = [1, 128], strides = [1, 1]} : vector<9x128xf32> to vector<1x128xf32>
    %12 = vector.broadcast %11 : vector<1x128xf32> to vector<8x128xf32>
    %13 = arith.mulf %10, %12 : vector<8x128xf32>
    %14 = vector.extract_strided_slice %0 {offsets = [0, 121], sizes = [8, 7], strides = [1, 1]} : vector<8x128xf32> to vector<8x7xf32>
    %15 = vector.extract_strided_slice %0 {offsets = [0, 0], sizes = [8, 121], strides = [1, 1]} : vector<8x128xf32> to vector<8x121xf32>
    %16 = tpu.concatenate %14, %15 in 1 : vector<8x7xf32>, vector<8x121xf32> -> vector<8x128xf32>
    %17 = vector.extract_strided_slice %1 {offsets = [2, 0], sizes = [1, 128], strides = [1, 1]} : vector<9x128xf32> to vector<1x128xf32>
    %18 = vector.broadcast %17 : vector<1x128xf32> to vector<8x128xf32>
    %19 = arith.mulf %16, %18 : vector<8x128xf32>
    %20 = vector.extract_strided_slice %0 {offsets = [0, 127], sizes = [8, 1], strides = [1, 1]} : vector<8x128xf32> to vector<8x1xf32>
    %21 = vector.extract_strided_slice %0 {offsets = [0, 0], sizes = [8, 127], strides = [1, 1]} : vector<8x128xf32> to vector<8x127xf32>
    %22 = tpu.concatenate %20, %21 in 1 : vector<8x1xf32>, vector<8x127xf32> -> vector<8x128xf32>
    %23 = vector.extract_strided_slice %1 {offsets = [3, 0], sizes = [1, 128], strides = [1, 1]} : vector<9x128xf32> to vector<1x128xf32>
    %24 = vector.broadcast %23 : vector<1x128xf32> to vector<8x128xf32>
    %25 = arith.mulf %22, %24 : vector<8x128xf32>
    %26 = vector.extract_strided_slice %0 {offsets = [0, 1], sizes = [8, 127], strides = [1, 1]} : vector<8x128xf32> to vector<8x127xf32>
    %27 = vector.extract_strided_slice %0 {offsets = [0, 0], sizes = [8, 1], strides = [1, 1]} : vector<8x128xf32> to vector<8x1xf32>
    %28 = tpu.concatenate %26, %27 in 1 : vector<8x127xf32>, vector<8x1xf32> -> vector<8x128xf32>
    %29 = vector.extract_strided_slice %1 {offsets = [5, 0], sizes = [1, 128], strides = [1, 1]} : vector<9x128xf32> to vector<1x128xf32>
    %30 = vector.broadcast %29 : vector<1x128xf32> to vector<8x128xf32>
    %31 = arith.mulf %28, %30 : vector<8x128xf32>
    %32 = vector.extract_strided_slice %0 {offsets = [0, 7], sizes = [8, 121], strides = [1, 1]} : vector<8x128xf32> to vector<8x121xf32>
    %33 = vector.extract_strided_slice %0 {offsets = [0, 0], sizes = [8, 7], strides = [1, 1]} : vector<8x128xf32> to vector<8x7xf32>
    %34 = tpu.concatenate %32, %33 in 1 : vector<8x121xf32>, vector<8x7xf32> -> vector<8x128xf32>
    %35 = vector.extract_strided_slice %1 {offsets = [6, 0], sizes = [1, 128], strides = [1, 1]} : vector<9x128xf32> to vector<1x128xf32>
    %36 = vector.broadcast %35 : vector<1x128xf32> to vector<8x128xf32>
    %37 = arith.mulf %34, %36 : vector<8x128xf32>
    %38 = vector.extract_strided_slice %0 {offsets = [0, 8], sizes = [8, 120], strides = [1, 1]} : vector<8x128xf32> to vector<8x120xf32>
    %39 = vector.extract_strided_slice %0 {offsets = [0, 0], sizes = [8, 8], strides = [1, 1]} : vector<8x128xf32> to vector<8x8xf32>
    %40 = tpu.concatenate %38, %39 in 1 : vector<8x120xf32>, vector<8x8xf32> -> vector<8x128xf32>
    %41 = vector.extract_strided_slice %1 {offsets = [7, 0], sizes = [1, 128], strides = [1, 1]} : vector<9x128xf32> to vector<1x128xf32>
    %42 = vector.broadcast %41 : vector<1x128xf32> to vector<8x128xf32>
    %43 = arith.mulf %40, %42 : vector<8x128xf32>
    %44 = vector.extract_strided_slice %0 {offsets = [0, 9], sizes = [8, 119], strides = [1, 1]} : vector<8x128xf32> to vector<8x119xf32>
    %45 = vector.extract_strided_slice %0 {offsets = [0, 0], sizes = [8, 9], strides = [1, 1]} : vector<8x128xf32> to vector<8x9xf32>
    %46 = tpu.concatenate %44, %45 in 1 : vector<8x119xf32>, vector<8x9xf32> -> vector<8x128xf32>
    %47 = vector.extract_strided_slice %1 {offsets = [8, 0], sizes = [1, 128], strides = [1, 1]} : vector<9x128xf32> to vector<1x128xf32>
    %48 = vector.broadcast %47 : vector<1x128xf32> to vector<8x128xf32>
    %49 = arith.mulf %46, %48 : vector<8x128xf32>
    %50 = tpu.concatenate %7, %13, %19, %25, %0, %31, %37, %43, %49 in 0 : vector<8x128xf32>, vector<8x128xf32>, vector<8x128xf32>, vector<8x128xf32>, vector<8x128xf32>, vector<8x128xf32>, vector<8x128xf32>, vector<8x128xf32>, vector<8x128xf32> -> vector<72x128xf32>
    %c0_3 = arith.constant 0 : index
    %c0_4 = arith.constant 0 : index
    %51 = vector.load %arg2[%c0_3, %c0_4] : memref<8x72xf32, #tpu.memory_space<vmem>>, vector<8x72xf32>
    %cst = arith.constant dense<0.000000e+00> : vector<8x128xf32>
    %52 = tpu.matmul %51, %50, %cst {dimension_numbers = #tpu.dot_dimension_numbers<[1], [0], [0], [1], [0, 0, 1, 1], [], []>} : vector<8x72xf32>, vector<72x128xf32>, vector<8x128xf32> -> vector<8x128xf32>
    %c0_5 = arith.constant 0 : index
    %c0_6 = arith.constant 0 : index
    %53 = vector.load %arg7[%c0_5, %c0_6] : memref<8x1xf32, #tpu.memory_space<vmem>>, vector<8x1xf32>
    %c0_7 = arith.constant 0 : index
    %c0_8 = arith.constant 0 : index
    %54 = vector.load %arg8[%c0_7, %c0_8] : memref<8x1xf32, #tpu.memory_space<vmem>>, vector<8x1xf32>
    %cst_9 = arith.constant dense<0.000000e+00> : vector<8xf32>
    %55 = vector.multi_reduction <add>, %52, %cst_9 [1] : vector<8x128xf32> to vector<8xf32>
    %56 = vector.shape_cast %55 : vector<8xf32> to vector<8x1xf32>
    %cst_10 = arith.constant 1.280000e+02 : f32
    %57 = vector.broadcast %cst_10 : f32 to vector<8x1xf32>
    %58 = arith.divf %56, %57 : vector<8x1xf32>
    %59 = vector.broadcast %58 : vector<8x1xf32> to vector<8x128xf32>
    %60 = arith.subf %52, %59 : vector<8x128xf32>
    %61 = arith.mulf %60, %60 : vector<8x128xf32>
    %cst_11 = arith.constant dense<0.000000e+00> : vector<8xf32>
    %62 = vector.multi_reduction <add>, %61, %cst_11 [1] : vector<8x128xf32> to vector<8xf32>
    %63 = vector.shape_cast %62 : vector<8xf32> to vector<8x1xf32>
    %cst_12 = arith.constant 1.280000e+02 : f32
    %64 = vector.broadcast %cst_12 : f32 to vector<8x1xf32>
    %65 = arith.divf %63, %64 : vector<8x1xf32>
    %cst_13 = arith.constant 9.99999974E-6 : f32
    %66 = vector.broadcast %cst_13 : f32 to vector<8x1xf32>
    %67 = arith.addf %65, %66 : vector<8x1xf32>
    %68 = math.rsqrt %67 : vector<8x1xf32>
    %69 = vector.broadcast %68 : vector<8x1xf32> to vector<8x128xf32>
    %70 = arith.mulf %60, %69 : vector<8x128xf32>
    %71 = vector.broadcast %53 : vector<8x1xf32> to vector<8x128xf32>
    %72 = arith.mulf %70, %71 : vector<8x128xf32>
    %73 = vector.broadcast %54 : vector<8x1xf32> to vector<8x128xf32>
    %74 = arith.addf %72, %73 : vector<8x128xf32>
    %cst_14 = arith.constant 0.000000e+00 : f32
    %75 = vector.broadcast %cst_14 : f32 to vector<8x128xf32>
    %76 = arith.maximumf %74, %75 : vector<8x128xf32>
    %c0_15 = arith.constant 0 : index
    %c0_16 = arith.constant 0 : index
    %77 = vector.load %arg6[%c0_15, %c0_16] : memref<128x512xf32, #tpu.memory_space<vmem>>, vector<128x512xf32>
    %cst_17 = arith.constant dense<0.000000e+00> : vector<8x512xf32>
    %78 = tpu.matmul %76, %77, %cst_17 {dimension_numbers = #tpu.dot_dimension_numbers<[1], [0], [0], [1], [0, 0, 1, 1], [], []>} : vector<8x128xf32>, vector<128x512xf32>, vector<8x512xf32> -> vector<8x512xf32>
    %c0_18 = arith.constant 0 : index
    %c0_19 = arith.constant 0 : index
    %79 = vector.load %arg1[%c0_18, %c0_19] : memref<8x512xf32, #tpu.memory_space<vmem>>, vector<8x512xf32>
    %80 = tpu.concatenate %78, %79 in 0 : vector<8x512xf32>, vector<8x512xf32> -> vector<16x512xf32>
    %c0_20 = arith.constant 0 : index
    %c0_21 = arith.constant 0 : index
    %81 = vector.load %arg5[%c0_20, %c0_21] : memref<9x512xf32, #tpu.memory_space<vmem>>, vector<9x512xf32>
    %82 = vector.extract_strided_slice %80 {offsets = [0, 495], sizes = [16, 17], strides = [1, 1]} : vector<16x512xf32> to vector<16x17xf32>
    %83 = vector.extract_strided_slice %80 {offsets = [0, 0], sizes = [16, 495], strides = [1, 1]} : vector<16x512xf32> to vector<16x495xf32>
    %84 = tpu.concatenate %82, %83 in 1 : vector<16x17xf32>, vector<16x495xf32> -> vector<16x512xf32>
    %85 = vector.extract_strided_slice %81 {offsets = [0, 0], sizes = [1, 512], strides = [1, 1]} : vector<9x512xf32> to vector<1x512xf32>
    %86 = vector.broadcast %85 : vector<1x512xf32> to vector<16x512xf32>
    %87 = arith.mulf %84, %86 : vector<16x512xf32>
    %88 = vector.extract_strided_slice %80 {offsets = [0, 496], sizes = [16, 16], strides = [1, 1]} : vector<16x512xf32> to vector<16x16xf32>
    %89 = vector.extract_strided_slice %80 {offsets = [0, 0], sizes = [16, 496], strides = [1, 1]} : vector<16x512xf32> to vector<16x496xf32>
    %90 = tpu.concatenate %88, %89 in 1 : vector<16x16xf32>, vector<16x496xf32> -> vector<16x512xf32>
    %91 = vector.extract_strided_slice %81 {offsets = [1, 0], sizes = [1, 512], strides = [1, 1]} : vector<9x512xf32> to vector<1x512xf32>
    %92 = vector.broadcast %91 : vector<1x512xf32> to vector<16x512xf32>
    %93 = arith.mulf %90, %92 : vector<16x512xf32>
    %94 = vector.extract_strided_slice %80 {offsets = [0, 497], sizes = [16, 15], strides = [1, 1]} : vector<16x512xf32> to vector<16x15xf32>
    %95 = vector.extract_strided_slice %80 {offsets = [0, 0], sizes = [16, 497], strides = [1, 1]} : vector<16x512xf32> to vector<16x497xf32>
    %96 = tpu.concatenate %94, %95 in 1 : vector<16x15xf32>, vector<16x497xf32> -> vector<16x512xf32>
    %97 = vector.extract_strided_slice %81 {offsets = [2, 0], sizes = [1, 512], strides = [1, 1]} : vector<9x512xf32> to vector<1x512xf32>
    %98 = vector.broadcast %97 : vector<1x512xf32> to vector<16x512xf32>
    %99 = arith.mulf %96, %98 : vector<16x512xf32>
    %100 = vector.extract_strided_slice %80 {offsets = [0, 511], sizes = [16, 1], strides = [1, 1]} : vector<16x512xf32> to vector<16x1xf32>
    %101 = vector.extract_strided_slice %80 {offsets = [0, 0], sizes = [16, 511], strides = [1, 1]} : vector<16x512xf32> to vector<16x511xf32>
    %102 = tpu.concatenate %100, %101 in 1 : vector<16x1xf32>, vector<16x511xf32> -> vector<16x512xf32>
    %103 = vector.extract_strided_slice %81 {offsets = [3, 0], sizes = [1, 512], strides = [1, 1]} : vector<9x512xf32> to vector<1x512xf32>
    %104 = vector.broadcast %103 : vector<1x512xf32> to vector<16x512xf32>
    %105 = arith.mulf %102, %104 : vector<16x512xf32>
    %106 = vector.extract_strided_slice %80 {offsets = [0, 1], sizes = [16, 511], strides = [1, 1]} : vector<16x512xf32> to vector<16x511xf32>
    %107 = vector.extract_strided_slice %80 {offsets = [0, 0], sizes = [16, 1], strides = [1, 1]} : vector<16x512xf32> to vector<16x1xf32>
    %108 = tpu.concatenate %106, %107 in 1 : vector<16x511xf32>, vector<16x1xf32> -> vector<16x512xf32>
    %109 = vector.extract_strided_slice %81 {offsets = [5, 0], sizes = [1, 512], strides = [1, 1]} : vector<9x512xf32> to vector<1x512xf32>
    %110 = vector.broadcast %109 : vector<1x512xf32> to vector<16x512xf32>
    %111 = arith.mulf %108, %110 : vector<16x512xf32>
    %112 = vector.extract_strided_slice %80 {offsets = [0, 15], sizes = [16, 497], strides = [1, 1]} : vector<16x512xf32> to vector<16x497xf32>
    %113 = vector.extract_strided_slice %80 {offsets = [0, 0], sizes = [16, 15], strides = [1, 1]} : vector<16x512xf32> to vector<16x15xf32>
    %114 = tpu.concatenate %112, %113 in 1 : vector<16x497xf32>, vector<16x15xf32> -> vector<16x512xf32>
    %115 = vector.extract_strided_slice %81 {offsets = [6, 0], sizes = [1, 512], strides = [1, 1]} : vector<9x512xf32> to vector<1x512xf32>
    %116 = vector.broadcast %115 : vector<1x512xf32> to vector<16x512xf32>
    %117 = arith.mulf %114, %116 : vector<16x512xf32>
    %118 = vector.extract_strided_slice %80 {offsets = [0, 16], sizes = [16, 496], strides = [1, 1]} : vector<16x512xf32> to vector<16x496xf32>
    %119 = vector.extract_strided_slice %80 {offsets = [0, 0], sizes = [16, 16], strides = [1, 1]} : vector<16x512xf32> to vector<16x16xf32>
    %120 = tpu.concatenate %118, %119 in 1 : vector<16x496xf32>, vector<16x16xf32> -> vector<16x512xf32>
    %121 = vector.extract_strided_slice %81 {offsets = [7, 0], sizes = [1, 512], strides = [1, 1]} : vector<9x512xf32> to vector<1x512xf32>
    %122 = vector.broadcast %121 : vector<1x512xf32> to vector<16x512xf32>
    %123 = arith.mulf %120, %122 : vector<16x512xf32>
    %124 = vector.extract_strided_slice %80 {offsets = [0, 17], sizes = [16, 495], strides = [1, 1]} : vector<16x512xf32> to vector<16x495xf32>
    %125 = vector.extract_strided_slice %80 {offsets = [0, 0], sizes = [16, 17], strides = [1, 1]} : vector<16x512xf32> to vector<16x17xf32>
    %126 = tpu.concatenate %124, %125 in 1 : vector<16x495xf32>, vector<16x17xf32> -> vector<16x512xf32>
    %127 = vector.extract_strided_slice %81 {offsets = [8, 0], sizes = [1, 512], strides = [1, 1]} : vector<9x512xf32> to vector<1x512xf32>
    %128 = vector.broadcast %127 : vector<1x512xf32> to vector<16x512xf32>
    %129 = arith.mulf %126, %128 : vector<16x512xf32>
    %130 = tpu.concatenate %87, %93, %99, %105, %80, %111, %117, %123, %129 in 0 : vector<16x512xf32>, vector<16x512xf32>, vector<16x512xf32>, vector<16x512xf32>, vector<16x512xf32>, vector<16x512xf32>, vector<16x512xf32>, vector<16x512xf32>, vector<16x512xf32> -> vector<144x512xf32>
    %c0_22 = arith.constant 0 : index
    %c0_23 = arith.constant 0 : index
    %131 = vector.load %arg3[%c0_22, %c0_23] : memref<8x144xf32, #tpu.memory_space<vmem>>, vector<8x144xf32>
    %cst_24 = arith.constant dense<0.000000e+00> : vector<8x512xf32>
    %132 = tpu.matmul %131, %130, %cst_24 {dimension_numbers = #tpu.dot_dimension_numbers<[1], [0], [0], [1], [0, 0, 1, 1], [], []>} : vector<8x144xf32>, vector<144x512xf32>, vector<8x512xf32> -> vector<8x512xf32>
    %c0_25 = arith.constant 0 : index
    %c0_26 = arith.constant 0 : index
    %133 = vector.load %arg9[%c0_25, %c0_26] : memref<8x1xf32, #tpu.memory_space<vmem>>, vector<8x1xf32>
    %c0_27 = arith.constant 0 : index
    %c0_28 = arith.constant 0 : index
    %134 = vector.load %arg10[%c0_27, %c0_28] : memref<8x1xf32, #tpu.memory_space<vmem>>, vector<8x1xf32>
    %cst_29 = arith.constant dense<0.000000e+00> : vector<8xf32>
    %135 = vector.multi_reduction <add>, %132, %cst_29 [1] : vector<8x512xf32> to vector<8xf32>
    %136 = vector.shape_cast %135 : vector<8xf32> to vector<8x1xf32>
    %cst_30 = arith.constant 5.120000e+02 : f32
    %137 = vector.broadcast %cst_30 : f32 to vector<8x1xf32>
    %138 = arith.divf %136, %137 : vector<8x1xf32>
    %139 = vector.broadcast %138 : vector<8x1xf32> to vector<8x512xf32>
    %140 = arith.subf %132, %139 : vector<8x512xf32>
    %141 = arith.mulf %140, %140 : vector<8x512xf32>
    %cst_31 = arith.constant dense<0.000000e+00> : vector<8xf32>
    %142 = vector.multi_reduction <add>, %141, %cst_31 [1] : vector<8x512xf32> to vector<8xf32>
    %143 = vector.shape_cast %142 : vector<8xf32> to vector<8x1xf32>
    %cst_32 = arith.constant 5.120000e+02 : f32
    %144 = vector.broadcast %cst_32 : f32 to vector<8x1xf32>
    %145 = arith.divf %143, %144 : vector<8x1xf32>
    %cst_33 = arith.constant 9.99999974E-6 : f32
    %146 = vector.broadcast %cst_33 : f32 to vector<8x1xf32>
    %147 = arith.addf %145, %146 : vector<8x1xf32>
    %148 = math.rsqrt %147 : vector<8x1xf32>
    %149 = vector.broadcast %148 : vector<8x1xf32> to vector<8x512xf32>
    %150 = arith.mulf %140, %149 : vector<8x512xf32>
    %151 = vector.broadcast %133 : vector<8x1xf32> to vector<8x512xf32>
    %152 = arith.mulf %150, %151 : vector<8x512xf32>
    %153 = vector.broadcast %134 : vector<8x1xf32> to vector<8x512xf32>
    %154 = arith.addf %152, %153 : vector<8x512xf32>
    %cst_34 = arith.constant 0.000000e+00 : f32
    %155 = vector.broadcast %cst_34 : f32 to vector<8x512xf32>
    %156 = arith.maximumf %154, %155 : vector<8x512xf32>
    %157 = vector.extract_strided_slice %156 {offsets = [0, 0], sizes = [8, 256], strides = [1, 1]} : vector<8x512xf32> to vector<8x256xf32>
    %c0_35 = arith.constant 0 : index
    %c0_36 = arith.constant 0 : index
    %c0_37 = arith.constant 0 : index
    %158 = vector.load %arg11[%c0_35, %c0_36, %c0_37] : memref<2x8x256xf32, #tpu.memory_space<vmem>>, vector<1x8x256xf32>
    %159 = vector.shape_cast %158 : vector<1x8x256xf32> to vector<8x256xf32>
    %160 = vector.shape_cast %157 : vector<8x256xf32> to vector<1x8x256xf32>
    tpu.vector_store %arg11[%c0_35, %c0_36, %c0_37], %160 {strides = array<i32>} : memref<2x8x256xf32, #tpu.memory_space<vmem>>, vector<1x8x256xf32>,
    %161 = vector.extract_strided_slice %156 {offsets = [0, 256], sizes = [8, 256], strides = [1, 1]} : vector<8x512xf32> to vector<8x256xf32>
    %c1 = arith.constant 1 : index
    %c0_38 = arith.constant 0 : index
    %c0_39 = arith.constant 0 : index
    %162 = vector.load %arg11[%c1, %c0_38, %c0_39] : memref<2x8x256xf32, #tpu.memory_space<vmem>>, vector<1x8x256xf32>
    %163 = vector.shape_cast %162 : vector<1x8x256xf32> to vector<8x256xf32>
    %164 = vector.shape_cast %161 : vector<8x256xf32> to vector<1x8x256xf32>
    tpu.vector_store %arg11[%c1, %c0_38, %c0_39], %164 {strides = array<i32>} : memref<2x8x256xf32, #tpu.memory_space<vmem>>, vector<1x8x256xf32>,
    return
  }
}

</mosaic_0001>

<bundles_post_ra>
// kernel: tpu_custom_call.1
= control target key start
LH: loop header
LB: loop body
LE: loop exit
PB: predicated region body
PF: predicated region fallthrough
CT: control target
= control target key end

     0   :  { %16 = vsyncpa [#allocation3], 0  ;;  %s2219_s0 = inlined_call_operand.hbm [shape: f32[8,128], index: 0, kind: input, shape index: {}]   ;;  %s2220_s1 = inlined_call_operand.vmem [shape: f32[8,512], index: 1, kind: input, shape index: {}]   ;;  %s2221_s2 = inlined_call_operand.hbm [shape: f32[8,72], index: 2, kind: input, shape index: {}]   ;;  %s2222_s3 = inlined_call_operand.hbm [shape: f32[8,144], index: 3, kind: input, shape index: {}]   ;;  %s2223_s4 = inlined_call_operand.vmem [shape: f32[9,128], index: 4, kind: input, shape index: {}]   ;;  %s2224_s5 = inlined_call_operand.hbm [shape: f32[9,512], index: 5, kind: input, shape index: {}]   ;;  %s2225_s6 = inlined_call_operand.hbm [shape: f32[128,512], index: 6, kind: input, shape index: {}]   ;;  %s2226_s7 = inlined_call_operand.vmem [shape: f32[8,1], index: 7, kind: input, shape index: {}]   ;;  %s2227_s8 = inlined_call_operand.vmem [shape: f32[8,1], index: 8, kind: input, shape index: {}]   ;;  %s2228_s9 = inlined_call_operand.vmem [shape: f32[8,1], index: 9, kind: input, shape index: {}]   ;;  %s2229_s10 = inlined_call_operand.vmem [shape: f32[8,1], index: 10, kind: input, shape index: {}]   ;;  %s2230_s11 = inlined_call_operand.hbm [shape: f32[2,8,256], index: 11, kind: output, shape index: {}]  }
   0x1   :  { %17 = vsyncpa [#allocation6], 0 }
   0x2   :  { %18 = vsyncpa [#allocation9], 0 }
   0x3   :  { %19 = vsyncpa [#allocation4], 0  ;;  %s1551_s17 = smov [#allocation5]   ;;  %s1552_s19 = smov [#allocation8]  }
   0x4   :  { %s38_s18 = sshll.u32 %s1551_s17, 4  ;;  %s59_s20 = sshll.u32 %s1552_s19, 4  ;;  %s39_s18 = int_to_ptr.vmem [resolvable:$true] %s38_s18  ;;  %s1638_s20 = int_to_ptr.vmem [resolvable:$true] %s59_s20 }
   0x5   :  { %s1411_s23 = scalar_lea.hbm %s2221_s2, 128 }
   0x6   :  { %p1412_p0 = scmp.ne.s32.totalorder %s2221_s2, %s1411_s23  ;;  %p1415_p1 = scmp.lt.u32.totalorder %s1411_s23, %s2221_s2 }
   0x8   :  { %p1417_p2 = pnand %p1415_p1, %p1412_p0 }
   0xa   :  { %1420 = shalt.err (!%p1417_p2)
}
   0xb   :  { %s1421_s28 = scalar_lea.vmem %s39_s18, 128  ;;  %p1426_p4 = scmp.lt.s32.totalorder %s39_s18, %s39_s18 }
   0xc   :  { %p1422_p3 = scmp.ne.s32.totalorder %s39_s18, %s1421_s28  ;;  %p1427_p5 = scmp.lt.s32.totalorder %s1421_s28, %s1421_s28 }
   0xe   :  { %p1428_p6 = por %p1427_p5, %p1426_p4 }
  0x10   :  { %p1429_p7 = pnand %p1428_p6, %p1422_p3 }
  0x12   :  { %1432 = shalt.err (!%p1429_p7)
}
  0x13   :  { %41 = dma.hbm_to_vmem [thread:$0]  %s2221_s2, 128, %s39_s18, [#allocation6]  }
  0x14   :  { %s1433_s14 = scalar_lea.hbm %s2224_s5, 1024 }
  0x15   :  { %p1434_p8 = scmp.ne.s32.totalorder %s2224_s5, %s1433_s14  ;;  %p1437_p9 = scmp.lt.u32.totalorder %s1433_s14, %s2224_s5 }
  0x17   :  { %p1439_p10 = pnand %p1437_p9, %p1434_p8 }
  0x19   :  { %1442 = shalt.err (!%p1439_p10)
}
  0x1a   :  { %s1443_s21 = scalar_lea.vmem %s1638_s20, 1024  ;;  %p1448_p12 = scmp.lt.s32.totalorder %s1638_s20, %s1638_s20 }
  0x1b   :  { %p1444_p11 = scmp.ne.s32.totalorder %s1638_s20, %s1443_s21  ;;  %p1449_p13 = scmp.lt.s32.totalorder %s1443_s21, %s1443_s21 }
  0x1d   :  { %p1450_p0 = por %p1449_p13, %p1448_p12 }
  0x1f   :  { %p1451_p1 = pnand %p1450_p0, %p1444_p11 }
  0x21   :  { %1454 = shalt.err (!%p1451_p1)
}
  0x22   :  { %s1553_s2 = smov 512   ;;  %s1554_s18 = smov 32  }
  0x23   :  { %65 = dma.hbm_to_vmem [thread:$0]  %s2224_s5, 1024, %s1638_s20, [#allocation9], %s1553_s2, %s1553_s2, %s1554_s18  }
  0x24   :  { %s1555_s24 = smov [#allocation2]   ;;  %s1556_s26 = smov [#allocation7]  }
  0x25   :  { %s26_s25 = sshll.u32 %s1555_s24, 4  ;;  %s48_s27 = sshll.u32 %s1556_s26, 4  ;;  %s27_s25 = int_to_ptr.vmem [resolvable:$true] %s26_s25  ;;  %s49_s27 = int_to_ptr.vmem [resolvable:$true] %s48_s27 }
  0x26   :  { %s1455_s30 = scalar_lea.hbm %s2219_s0, 128 }
  0x27   :  { %p1456_p2 = scmp.ne.s32.totalorder %s2219_s0, %s1455_s30  ;;  %p1459_p3 = scmp.lt.u32.totalorder %s1455_s30, %s2219_s0 }
  0x29   :  { %p1461_p4 = pnand %p1459_p3, %p1456_p2 }
  0x2b   :  { %1464 = shalt.err (!%p1461_p4)
}
  0x2c   :  { %s1465_s5 = scalar_lea.vmem %s27_s25, 128  ;;  %p1470_p6 = scmp.lt.s32.totalorder %s27_s25, %s27_s25 }
  0x2d   :  { %p1466_p5 = scmp.ne.s32.totalorder %s27_s25, %s1465_s5  ;;  %p1471_p7 = scmp.lt.s32.totalorder %s1465_s5, %s1465_s5 }
  0x2f   :  { %p1472_p8 = por %p1471_p7, %p1470_p6 }
  0x31   :  { %p1473_p9 = pnand %p1472_p8, %p1466_p5 }
  0x33   :  { %1476 = shalt.err (!%p1473_p9)
}
  0x34   :  { %29 = dma.hbm_to_vmem [thread:$0]  %s2219_s0, 128, %s27_s25, [#allocation3]  }
  0x35   :  { %s1477_s21 = scalar_lea.hbm %s2222_s3, 256 }
  0x36   :  { %p1478_p10 = scmp.ne.s32.totalorder %s2222_s3, %s1477_s21  ;;  %p1481_p11 = scmp.lt.u32.totalorder %s1477_s21, %s2222_s3 }
  0x38   :  { %p1483_p12 = pnand %p1481_p11, %p1478_p10 }
  0x3a   :  { %1486 = shalt.err (!%p1483_p12)
}
  0x3b   :  { %s1487_s28 = scalar_lea.vmem %s49_s27, 256  ;;  %p1492_p0 = scmp.lt.s32.totalorder %s49_s27, %s49_s27 }
  0x3c   :  { %p1488_p13 = scmp.ne.s32.totalorder %s49_s27, %s1487_s28  ;;  %p1493_p1 = scmp.lt.s32.totalorder %s1487_s28, %s1487_s28 }
  0x3e   :  { %p1494_p2 = por %p1493_p1, %p1492_p0 }
  0x40   :  { %p1495_p3 = pnand %p1494_p2, %p1488_p13 }
  0x42   :  { %1498 = shalt.err (!%p1495_p3)
}
  0x43   :  { %51 = dma.hbm_to_vmem [thread:$0]  %s2222_s3, 256, %s49_s27, [#allocation6]  }
  0x44   :  { %s1557_s29 = smov [#allocation10]   ;;  %s1499_s14 = scalar_lea.hbm %s2225_s6, 8192 }
  0x45   :  { %s71_s30 = sshll.u32 %s1557_s29, 4  ;;  %p1500_p4 = scmp.ne.s32.totalorder %s2225_s6, %s1499_s14  ;;  %s72_s30 = int_to_ptr.vmem [resolvable:$true] %s71_s30 }
  0x46   :  { %p1503_p5 = scmp.lt.u32.totalorder %s1499_s14, %s2225_s6 }
  0x48   :  { %p1505_p6 = pnand %p1503_p5, %p1500_p4 }
  0x4a   :  { %1508 = shalt.err (!%p1505_p6)
}
  0x4b   :  { %s1509_s17 = scalar_lea.vmem %s72_s30, 8192  ;;  %p1514_p8 = scmp.lt.s32.totalorder %s72_s30, %s72_s30 }
  0x4c   :  { %p1510_p7 = scmp.ne.s32.totalorder %s72_s30, %s1509_s17  ;;  %p1515_p9 = scmp.lt.s32.totalorder %s1509_s17, %s1509_s17 }
  0x4e   :  { %p1516_p10 = por %p1515_p9, %p1514_p8 }
  0x50   :  { %p1517_p11 = pnand %p1516_p10, %p1510_p7 }
  0x52   :  { %1520 = shalt.err (!%p1517_p11)
}
  0x53   :  { %77 = dma.hbm_to_vmem [thread:$0]  %s2225_s6, 8192, %s72_s30, [#allocation9], %s1553_s2, %s1553_s2, %s1554_s18  }
  0x54   :  { %1543 = dma.done.wait [#allocation3], 128  }
  0x55   :  { %1544 = vsyncadd [#allocation3], 4294967168 }
  0x56   :  { %1545 = dma.done.wait [#allocation6], 384  }
  0x57   :  { %1546 = vsyncadd [#allocation6], 4294966912 }
  0x58   :  { %1547 = dma.done.wait [#allocation9], 9216  }
  0x59   :  { %1548 = vsyncadd [#allocation9], 4294958080  ;;  %v1558_v0 = vmov 0.0|0.0   ;;  %v101_v1 = vld [vmem:[#allocation2] sm:$0xff]  ;;  %s1559_s19 = smov 7   ;;  %s1560_s21 = smov 9   ;;  %v108_v3 = vlaneseq }
  0x5a   :  { %1230 = vmatprep.subr.bf16.mxu0 %v1558_v0  ;;  %121 = vrot.lane.b32.xlu1 %v101_v1, %s1559_s19  ;;  %s1561_s22 = smov 1   ;;  %s1562_s23 = smov 8   ;;  %v1565_v2 = vmov 0.0   ;;  %vm1566_vm0 = vmmov 0   ;;  %v102_v7 = vld [vmem:[%s2223_s4] sm:$0xff]  ;;  %v171_v41 = vld [vmem:[#allocation5] sm:$0xff] }
  0x5b   :  { %105 = vrot.lane.b32.xlu0 %v101_v1, %s1560_s21  ;;  %s1563_s24 = smov 127   ;;  %s1564_s6 = smov 121   ;;  %401 = vmatprep.mubr.f32.mxu1 %v1565_v2  ;;  %v109_v4 = vshrl.u32 %v108_v3, 7  ;;  %v1191_v38 = vld [vmem:[%s2223_s4 + $0x8] ss:$0 sm:$0xff]  ;;  %vm172_vm1 = vcmask 588800  }
  0x5c   :  { %1227 = vmatprep.mubr.msk.f32.mxu0 %vm1566_vm0, %v1565_v2  ;;  %s1567_s2 = smov 120   ;;  %s1568_s18 = smov 119   ;;  %v246_v44 = vld [vmem:[%s2226_s7] sm:$0xff]  ;;  %v1569_v45 = vmov 0   ;;  %v274_v46 = vld [vmem:[#allocation10 + $0x8] sm:$0xff]  ;;  %v276_v48 = vld [vmem:[#allocation10 + $0x18] sm:$0xff] }
  0x5d   :  { %v1713_v5 = vsub.s32 0, %v109_v4  ;;  %v1715_v6 = vsub.s32 1, %v109_v4  ;;  %v1720_v8 = vsub.s32 2, %v109_v4  ;;  %v1722_v9 = vsub.s32 3, %v109_v4  ;;  %1405 = vset.pattern.permute.xlu0 %v1569_v45  ;;  %1406 = vset.pattern.permute.xlu1 %v1569_v45  ;;  %v278_v47 = vld [vmem:[#allocation10 + $0x28] sm:$0xff]  ;;  %v280_v50 = vld [vmem:[#allocation10 + $0x38] sm:$0xff] }
  0x5e   :  { %129 = vrot.lane.b32.xlu1 %v101_v1, %s1561_s22  ;;  %v1726_v14 = vsub.s32 5, %v109_v4  ;;  %v1730_v19 = vsub.s32 6, %v109_v4  ;;  %v1733_v23 = vsub.s32 7, %v109_v4  ;;  %v1242_v49 = vpack.c.bf16 %v278_v47, %v274_v46  ;;  %v273_v51 = vld [vmem:[#allocation10] sm:$0xff]  ;;  %v275_v55 = vld [vmem:[#allocation10 + $0x10] sm:$0xff]  ;;  %v282_v57 = vld [vmem:[#allocation10 + $0x48] sm:$0xff] }
  0x5f   :  { %113 = vrot.lane.b32.xlu0 %v101_v1, %s1562_s23  ;;  %v111_v12 = vrot.slane %v102_v7, %v1713_v5  ;;  %v119_v13 = vrot.slane %v102_v7, %v1715_v6  ;;  %v127_v15 = vrot.slane %v102_v7, %v1720_v8  ;;  %v136_v16 = vrot.slane %v102_v7, %v1722_v9  ;;  %v277_v52 = vld [vmem:[#allocation10 + $0x20] sm:$0xff]  ;;  %v279_v56 = vld [vmem:[#allocation10 + $0x30] sm:$0xff]  ;;  %v286_v59 = vld [vmem:[#allocation10 + $0x68] sm:$0xff]  ;;  %s1570_s13 = smov 17   ;;  %s1571_s14 = smov 16  }
  0x60   :  { %v145_v22 = vrot.slane %v102_v7, %v1726_v14  ;;  %2237 = vst [vmem:[#allocation16_spill] sm:$0xff] %v1733_v23  ;;  %v153_v29 = vrot.slane %v102_v7, %v1730_v19  ;;  %v161_v30 = vrot.slane %v102_v7, %v1733_v23  ;;  %v1274_v53 = vpack.c.bf16 %v280_v50, %v276_v48  ;;  %v284_v60 = vld [vmem:[#allocation10 + $0x58] sm:$0xff]  ;;  %v287_v4 = vld [vmem:[#allocation10 + $0x70] sm:$0xff]  ;;  %v290_v7 = vld [vmem:[#allocation10 + $0x88] sm:$0xff]  ;;  %s1572_s20 = smov 15   ;;  %s1573_s19 = smov 113  }
  0x61   :  { %v1244_v54 = vpack.c.bf16 %v277_v52, %v273_v51  ;;  %1243 = vmatprep.subr.bf16.mxu1 %v1242_v49  ;;  %v1276_v58 = vpack.c.bf16 %v279_v56, %v275_v55  ;;  %v288_v61 = vld [vmem:[#allocation10 + $0x78] sm:$0xff]  ;;  %v1246_v62 = vpack.c.bf16 %v286_v59, %v282_v57  ;;  %v305_v47 = vld [vmem:[#allocation10 + $0x100] sm:$0xff]  ;;  %v307_v51 = vld [vmem:[#allocation10 + $0x110] sm:$0xff]  ;;  %s1574_s21 = smov 112   ;;  %vm517_vm2 = vcmask 138240  }
  0x62   :  { %147 = vrot.lane.b32.xlu1 %v101_v1, %s1564_s6  ;;  %v1278_v63 = vpack.c.bf16 %v288_v61, %v284_v60  ;;  %v312_v46 = vld [vmem:[#allocation10 + $0x138] sm:$0xff]  ;;  %v309_v48 = vld [vmem:[#allocation10 + $0x120] sm:$0xff]  ;;  %v311_v52 = vld [vmem:[#allocation10 + $0x130] sm:$0xff]  ;;  %vm576_vm3 = vcmask 130048   ;;  %vm635_vm4 = vcmask 121856   ;;  %vm132_vm5 = vcmask 7168  }
  0x63   :  { %138 = vrot.lane.b32.xlu0 %v101_v1, %s1563_s24  ;;  %1245 = vmatpush1.bf16.msra.mxu1 %v1244_v54  ;;  %v1260_v50 = vpack.c.bf16 %v309_v48, %v305_v47  ;;  %v1292_v54 = vpack.c.bf16 %v311_v52, %v307_v51  ;;  %v318_v55 = vld [vmem:[#allocation10 + $0x168] sm:$0xff]  ;;  %v316_v56 = vld [vmem:[#allocation10 + $0x158] sm:$0xff]  ;;  %v313_v60 = vld [vmem:[#allocation10 + $0x140] sm:$0xff]  ;;  %vm141_vm6 = vcmask 1039360   ;;  %vm808_vm7 = vcmask 924672  }
  0x64   :  { %1247 = vmatprep.subr.bf16.mxu1 %v1246_v62  ;;  %v320_v57 = vld [vmem:[#allocation10 + $0x178] sm:$0xff]  ;;  %v317_v61 = vld [vmem:[#allocation10 + $0x160] sm:$0xff]  ;;  %v315_v62 = vld [vmem:[#allocation10 + $0x150] sm:$0xff]  ;;  %vm867_vm8 = vcmask 916480   ;;  %vm926_vm9 = vcmask 908288  }
  0x65   :  { %v1294_v59 = vpack.c.bf16 %v320_v57, %v316_v56 }
  0x66   :  { %163 = vrot.lane.b32.xlu1 %v101_v1, %s1568_s18 }
  0x67   :  { %155 = vrot.lane.b32.xlu0 %v101_v1, %s1567_s2 }
  0xcc   :  { %v122_v10 = vpop.permute.xlu1 %121 }
  0xcd   :  { %v106_v11 = vpop.permute.xlu0 %105  ;;  %v128_v24 = vmul.f32 %v127_v15, %v122_v10  ;;  %v294_v10 = vld [vmem:[#allocation10 + $0xa8] sm:$0xff]  ;;  %v296_v15 = vld [vmem:[#allocation10 + $0xb8] sm:$0xff] }
  0xce   :  { %v112_v20 = vmul.f32 %v111_v12, %v106_v11  ;;  %v1250_v12 = vpack.c.bf16 %v294_v10, %v290_v7  ;;  %v324_v7 = vld [vmem:[#allocation10 + $0x198] sm:$0xff] }
  0xcf   :  { %v328_v10 = vld [vmem:[#allocation10 + $0x1b8] sm:$0xff] }
  0xd0   :  { %v130_v17 = vpop.permute.xlu1 %129 }
  0xd1   :  { %v114_v18 = vpop.permute.xlu0 %113  ;;  %v137_v25 = vmul.f32 %v136_v16, %v130_v17 }
  0xd2   :  { %v120_v21 = vmul.f32 %v119_v13, %v114_v18  ;;  %v292_v13 = vld [vmem:[#allocation10 + $0x98] sm:$0xff] }
  0xd3   :  { %v1234_v32 = vpack.c.bf16 %v137_v25, %v128_v24  ;;  %v1282_v16 = vpack.c.bf16 %v296_v15, %v292_v13  ;;  %v293_v24 = vld [vmem:[#allocation10 + $0xa0] sm:$0xff]  ;;  %v291_v25 = vld [vmem:[#allocation10 + $0x90] sm:$0xff] }
  0xd4   :  { %v1231_v26 = vpack.c.bf16 %v120_v21, %v112_v20  ;;  %v148_v31 = vpop.permute.xlu1 %147  ;;  %v325_v13 = vld [vmem:[#allocation10 + $0x1a0] sm:$0xff]  ;;  %v323_v15 = vld [vmem:[#allocation10 + $0x190] sm:$0xff] }
  0xd5   :  { %v139_v27 = vpop.permute.xlu0 %138  ;;  %v154_v35 = vmul.f32 %v153_v29, %v148_v31  ;;  %v302_v31 = vld [vmem:[#allocation10 + $0xe8] sm:$0xff] }
  0xd6   :  { %1232 = vmatpush3.bf16.msra.mxu0 %v1231_v26  ;;  %v146_v28 = vmul.f32 %v145_v22, %v139_v27  ;;  %v289_v22 = vld [vmem:[#allocation10 + $0x80] sm:$0xff]  ;;  %v295_v27 = vld [vmem:[#allocation10 + $0xb0] sm:$0xff] }
  0xd7   :  { %1233 = vmatprep.subr.bf16.mxu0 %v1558_v0  ;;  %v1252_v26 = vpack.c.bf16 %v293_v24, %v289_v22  ;;  %v1284_v29 = vpack.c.bf16 %v295_v27, %v291_v25  ;;  %v334_v22 = vld [vmem:[#allocation10 + $0x1e8] sm:$0xff]  ;;  %v332_v24 = vld [vmem:[#allocation10 + $0x1d8] sm:$0xff]  ;;  %v329_v27 = vld [vmem:[#allocation10 + $0x1c0] sm:$0xff] }
  0xd8   :  { %v1237_v34 = vpack.c.bf16 %v146_v28, %v101_v1  ;;  %v164_v39 = vpop.permute.xlu1 %163  ;;  %v285_v1 = vld [vmem:[#allocation10 + $0x60] sm:$0xff] }
  0xd9   :  { %v156_v33 = vpop.permute.xlu0 %155  ;;  %v170_v40 = vmul.f32 %v1191_v38, %v164_v39  ;;  %v247_v28 = vld [vmem:[%s2227_s8] sm:$0xff]  ;;  %v299_v39 = vld [vmem:[#allocation10 + $0xd0] sm:$0xff] }
  0xda   :  { %1235 = vmatpush3.bf16.msra.mxu0 %v1234_v32  ;;  %v162_v36 = vmul.f32 %v161_v30, %v156_v33  ;;  %v298_v30 = vld [vmem:[#allocation10 + $0xc8] sm:$0xff]  ;;  %v300_v32 = vld [vmem:[#allocation10 + $0xd8] sm:$0xff] }
  0xdb   :  { %1236 = vmatprep.subr.bf16.mxu0 %v1558_v0  ;;  %v1254_v33 = vpack.c.bf16 %v302_v31, %v298_v30  ;;  %v331_v31 = vld [vmem:[#allocation10 + $0x1d0] sm:$0xff] }
  0xdc   :  { %v1240_v37 = vpack.c.bf16 %v162_v36, %v154_v35  ;;  %v297_v35 = vld [vmem:[#allocation10 + $0xc0] sm:$0xff] }
  0xdd   :  { %v301_v36 = vld [vmem:[#allocation10 + $0xe0] sm:$0xff] }
  0xde   :  { %1238 = vmatpush3.bf16.msra.mxu0 %v1237_v34  ;;  %v304_v34 = vld [vmem:[#allocation10 + $0xf8] sm:$0xff]  ;;  %v1256_v38 = vpack.c.bf16 %v301_v36, %v297_v35  ;;  %v1762_v35 = vld [vmem:[%s2220_s1 + $0x8] sm:$0xff] }
  0xdf   :  { %1239 = vmatprep.subr.bf16.mxu0 %v1558_v0  ;;  %v281_v0 = vld [vmem:[#allocation10 + $0x40] sm:$0xff]  ;;  %v1771_v36 = vld [vmem:[%s2220_s1 + $0x18] sm:$0xff] }
  0xe0   :  { %v1248_v3 = vpack.c.bf16 %v285_v1, %v281_v0  ;;  %v319_v0 = vld [vmem:[#allocation10 + $0x170] sm:$0xff]  ;;  %v322_v1 = vld [vmem:[#allocation10 + $0x188] sm:$0xff] }
  0xe2   :  { %1241 = vmatpush3.bf16.msra.mxu0 %v1240_v37  ;;  %1249 = vmatpush1.bf16.msra.mxu1 %v1248_v3  ;;  %v1286_v37 = vpack.c.bf16 %v304_v34, %v300_v32  ;;  %v1296_v3 = vpack.c.bf16 %v319_v0, %v315_v62  ;;  %v335_v32 = vld [vmem:[#allocation10 + $0x1f0] sm:$0xff]  ;;  %v1753_v34 = vld [vmem:[%s2220_s1] sm:$0xff] }
  0xe3   :  { %1225 = vmatprep.subr.mxu0 %v1565_v2  ;;  %1251 = vmatprep.subr.bf16.mxu1 %v1250_v12  ;;  %v1298_v12 = vpack.c.bf16 %v328_v10, %v324_v7 }
  0xe6   :  { %1226 = vmatpush3.msra.mxu0 %v170_v40  ;;  %1253 = vmatpush1.bf16.msra.mxu1 %v1252_v26  ;;  %v303_v40 = vld [vmem:[#allocation10 + $0xf0] sm:$0xff]  ;;  %v336_v26 = vld [vmem:[#allocation10 + $0x1f8] sm:$0xff] }
  0xe7   :  { %1228 = vmatmul.mubr.msk.f32.vlgmr.msra.gmra.mrb[0].mxu0 %vm172_vm1, %v171_v41  ;;  %1275 = vmatprep.subr.bf16.mxu0 %v1274_v53  ;;  %v1288_v41 = vpack.c.bf16 %v303_v40, %v299_v39  ;;  %v314_v53 = vld [vmem:[#allocation10 + $0x148] sm:$0xff] }
  0xe8   :  { %472 = vmatprep.mubr.f32.mxu0 %v1565_v2  ;;  %v283_v2 = vld [vmem:[#allocation10 + $0x50] sm:$0xff]  ;;  %1277 = vmatpush1.bf16.msra.mxu0 %v1276_v58  ;;  %v1262_v58 = vpack.c.bf16 %v318_v55, %v314_v53 }
  0xe9   :  { %1279 = vmatprep.subr.bf16.mxu0 %v1278_v63  ;;  %v1280_v11 = vpack.c.bf16 %v287_v4, %v283_v2  ;;  %1255 = vmatprep.subr.bf16.mxu1 %v1254_v33  ;;  %v1264_v63 = vpack.c.bf16 %v317_v61, %v313_v60  ;;  %v326_v2 = vld [vmem:[#allocation10 + $0x1a8] sm:$0xff]  ;;  %v1304_v33 = vpack.c.bf16 %v335_v32, %v331_v31 }
  0xea   :  { %1257 = vmatpush1.bf16.msra.mxu1 %v1256_v38  ;;  %v1266_v4 = vpack.c.bf16 %v326_v2, %v322_v1 }
  0xec   :  { %1281 = vmatpush1.bf16.msra.mxu0 %v1280_v11  ;;  %v321_v11 = vld [vmem:[#allocation10 + $0x180] sm:$0xff] }
  0xed   :  { %1283 = vmatprep.subr.bf16.mxu0 %v1282_v16  ;;  %v327_v16 = vld [vmem:[#allocation10 + $0x1b0] sm:$0xff] }
  0xf0   :  { %1285 = vmatpush1.bf16.msra.mxu0 %v1284_v29  ;;  %v1302_v29 = vpack.c.bf16 %v336_v26, %v332_v24 }
  0xf1   :  { %1287 = vmatprep.subr.bf16.mxu0 %v1286_v37  ;;  %v1780_v37 = vld [vmem:[%s2220_s1 + $0x10] sm:$0xff]  ;;  %s1575_s1 = smov 111  }
  0xf4   :  { %1289 = vmatpush1.bf16.msra.mxu0 %v1288_v41 }
 0x1ba   :  { %v242_v42 = vpop.f32.mrb[0].mxu0 }
 0x1bb   :  { %248 = vadd.xlane.f32.xlu0 %v242_v42  ;;  %v1229_v43 = vpop.f32.mrb[1].mxu0 }
 0x1bc   :  { %v310_v43 = vld [vmem:[#allocation10 + $0x128] sm:$0xff] }
 0x1d1   :  { %262 = vperm.xlu0 %1405, %v246_v44   ;;  %v308_v44 = vld [vmem:[#allocation10 + $0x118] sm:$0xff] }
 0x1d2   :  { %v1290_v49 = vpack.c.bf16 %v312_v46, %v308_v44 }
 0x1d4   :  { %1291 = vmatprep.subr.bf16.mxu0 %v1290_v49 }
 0x1d5   :  { %1293 = vmatpush1.bf16.msra.mxu0 %v1292_v54  ;;  %570 = vrot.lane.b32.xlu0 %v1753_v34, %s1571_s14 }
 0x1d6   :  { %1295 = vmatprep.subr.bf16.mxu0 %v1294_v59 }
 0x1d9   :  { %1297 = vmatpush1.bf16.msra.mxu0 %v1296_v3  ;;  %629 = vrot.lane.b32.xlu0 %v1753_v34, %s1572_s20 }
 0x1da   :  { %1299 = vmatprep.subr.bf16.mxu0 %v1298_v12 }
 0x1dd   :  { %688 = vrot.lane.b32.xlu0 %v1753_v34, %s1561_s22 }
 0x1e1   :  { %744 = vrot.lane.b32.xlu0 %v1762_v35, %s1563_s24 }
 0x1e5   :  { %802 = vrot.lane.b32.xlu0 %v1762_v35, %s1573_s19 }
 0x1e9   :  { %861 = vrot.lane.b32.xlu0 %v1762_v35, %s1574_s21 }
 0x248   :  { %v249_v17 = vpop.xlane.xlu0 %248 }
 0x249   :  { %v251_v18 = vmul.f32 0.0078125, %v249_v17  ;;  %v1268_v17 = vpack.c.bf16 %v325_v13, %v321_v11 }
 0x24b   :  { %v1743_v20 = vsub.f32 %v242_v42, %v251_v18  ;;  %v306_v42 = vld [vmem:[#allocation10 + $0x108] sm:$0xff]  ;;  %v1300_v18 = vpack.c.bf16 %v327_v16, %v323_v15 }
 0x24c   :  { %v1258_v45 = vpack.c.bf16 %v310_v43, %v306_v42 }
 0x24d   :  { %v253_v21 = vmul.f32 %v1743_v20, %v1743_v20  ;;  %1301 = vmatpush1.bf16.msra.mxu0 %v1300_v18 }
 0x24e   :  { %1259 = vmatprep.subr.bf16.mxu1 %v1258_v45  ;;  %1303 = vmatprep.subr.bf16.mxu0 %v1302_v29 }
 0x24f   :  { %254 = vadd.xlane.f32.xlu1 %v253_v21  ;;  %1261 = vmatpush1.bf16.msra.mxu1 %v1260_v50  ;;  %v330_v21 = vld [vmem:[#allocation10 + $0x1c8] sm:$0xff] }
 0x250   :  { %1263 = vmatprep.subr.bf16.mxu1 %v1262_v58  ;;  %v1270_v25 = vpack.c.bf16 %v334_v22, %v330_v21  ;;  %v263_v42 = vpop.permute.xlu0 %262 }
 0x251   :  { %1305 = vmatpush1.bf16.msra.mxu0 %v1304_v33 }
 0x253   :  { %1265 = vmatpush1.bf16.msra.mxu1 %v1264_v63 }
 0x254   :  { %1267 = vmatprep.subr.bf16.mxu1 %v1266_v4  ;;  %v1862_v10 = vpop.permute.xlu0 %570 }
 0x257   :  { %1269 = vmatpush1.bf16.msra.mxu1 %v1268_v17 }
 0x258   :  { %1271 = vmatprep.subr.bf16.mxu1 %v1270_v25  ;;  %v1868_v15 = vpop.permute.xlu0 %629 }
 0x25c   :  { %v1874_v18 = vpop.permute.xlu0 %688 }
 0x260   :  { %268 = vperm.xlu1 %1406, %v247_v28   ;;  %v333_v28 = vld [vmem:[#allocation10 + $0x1e0] sm:$0xff]  ;;  %v745_v26 = vpop.permute.xlu0 %744 }
 0x261   :  { %v1272_v30 = vpack.c.bf16 %v333_v28, %v329_v27 }
 0x263   :  { %1273 = vmatpush1.bf16.msra.mxu1 %v1272_v30 }
 0x264   :  { %511 = vrot.lane.b32.xlu1 %v1753_v34, %s1570_s13  ;;  %v803_v30 = vpop.permute.xlu0 %802 }
 0x268   :  { %513 = vrot.lane.b32.xlu1 %v1762_v35, %s1570_s13 }
 0x26c   :  { %495 = vrot.lane.b32.xlu1 %v1771_v36, %s1570_s13 }
 0x270   :  { %515 = vrot.lane.b32.xlu1 %v1780_v37, %s1570_s13 }
 0x274   :  { %572 = vrot.lane.b32.xlu1 %v1762_v35, %s1571_s14 }
 0x278   :  { %560 = vrot.lane.b32.xlu1 %v1771_v36, %s1571_s14 }
 0x27c   :  { %574 = vrot.lane.b32.xlu1 %v1780_v37, %s1571_s14 }
 0x280   :  { %631 = vrot.lane.b32.xlu1 %v1762_v35, %s1572_s20 }
 0x284   :  { %619 = vrot.lane.b32.xlu1 %v1771_v36, %s1572_s20 }
 0x288   :  { %633 = vrot.lane.b32.xlu1 %v1780_v37, %s1572_s20 }
 0x28c   :  { %690 = vrot.lane.b32.xlu1 %v1762_v35, %s1561_s22 }
 0x290   :  { %678 = vrot.lane.b32.xlu1 %v1771_v36, %s1561_s22 }
 0x294   :  { %692 = vrot.lane.b32.xlu1 %v1780_v37, %s1561_s22 }
 0x298   :  { %746 = vrot.lane.b32.xlu1 %v1780_v37, %s1563_s24 }
 0x29c   :  { %742 = vrot.lane.b32.xlu1 %v1753_v34, %s1563_s24 }
 0x2a0   :  { %748 = vrot.lane.b32.xlu1 %v1771_v36, %s1563_s24 }
 0x2a4   :  { %804 = vrot.lane.b32.xlu1 %v1780_v37, %s1573_s19 }
 0x2a8   :  { %800 = vrot.lane.b32.xlu1 %v1753_v34, %s1573_s19 }
 0x2ac   :  { %806 = vrot.lane.b32.xlu1 %v1771_v36, %s1573_s19 }
 0x2b0   :  { %863 = vrot.lane.b32.xlu1 %v1780_v37, %s1574_s21 }
 0x2dc   :  { %v255_v38 = vpop.xlane.xlu1 %254 }
 0x2dd   :  { %v256_v39 = vmul.f32 0.0078125, %v255_v38 }
 0x2df   :  { %v257_v40 = vadd.f32 1e-05, %v256_v39 }
 0x2e0   :  { %v269_v44 = vpop.permute.xlu1 %268 }
 0x2e1   :  { %1407 = vrsqrt.f32 %v257_v40 }
 0x2e4   :  { %v512_v48 = vpop.permute.xlu1 %511 }
 0x2e8   :  { %v514_v49 = vpop.permute.xlu1 %513 }
 0x2e9   :  { %v1824_v50 = vsel %vm517_vm2, %v512_v48, %v514_v49 }
 0x2eb   :  { %v1408_v41 = vpop.eup %1407 }
 0x2ec   :  { %v259_v43 = vmul.f32 %v1408_v41, %v1743_v20  ;;  %v496_v51 = vpop.permute.xlu1 %495 }
 0x2ed   :  { %v1827_v52 = vsel %vm517_vm2, %v496_v51, %v512_v48 }
 0x2ee   :  { %v265_v45 = vmul.f32 %v263_v42, %v259_v43 }
 0x2f0   :  { %v271_v46 = vadd.f32 %v269_v44, %v265_v45  ;;  %v516_v53 = vpop.permute.xlu1 %515  ;;  %v970_v44 = vld [vmem:[#allocation7 + $0x8] sm:$0xff] }
 0x2f1   :  { %v1830_v54 = vsel %vm517_vm2, %v514_v49, %v516_v53  ;;  %v1833_v20 = vsel %vm517_vm2, %v516_v53, %v496_v51 }
 0x2f2   :  { %v272_v47 = vmax.f32 %v271_v46, 0.0  ;;  %v1984_v46 = vpop.permute.xlu0 %861 }
 0x2f3   :  { %2244 = vst [vmem:[#allocation23_spill] sm:$0xff] %v1984_v46 }
 0x2f4   :  { %402 = vmatmul.mubr.f32.vlgmr.msra.gmra.mrb[0].mxu1 %v272_v47  ;;  %473 = vmatmul.mubr.f32.vlgmr.msra.gmra.mrb[2].mxu0 %v272_v47  ;;  %v1835_v55 = vpop.permute.xlu1 %572 }
 0x2f5   :  { %1197 = vmatprep.mubr.msk.f32.mxu1 %vm576_vm3, %v970_v44  ;;  %1198 = vmatprep.mubr.msk.f32.mxu0 %vm576_vm3, %v970_v44 }
 0x2f8   :  { %v561_v56 = vpop.permute.xlu1 %560 }
 0x2f9   :  { %v1866_v11 = vsel %vm576_vm3, %v561_v56, %v1862_v10 }
 0x2fc   :  { %v575_v57 = vpop.permute.xlu1 %574 }
 0x2fd   :  { %v1839_v58 = vsel %vm576_vm3, %v1835_v55, %v575_v57  ;;  %v1842_v59 = vsel %vm576_vm3, %v575_v57, %v561_v56  ;;  %v1994_v57 = vld [vmem:[#allocation8 + $0x8] sm:$0xff] }
 0x300   :  { %v1844_v60 = vpop.permute.xlu1 %631 }
 0x304   :  { %v620_v61 = vpop.permute.xlu1 %619 }
 0x305   :  { %v1872_v16 = vsel %vm635_vm4, %v620_v61, %v1868_v15 }
 0x308   :  { %v634_v62 = vpop.permute.xlu1 %633 }
 0x309   :  { %v1848_v63 = vsel %vm635_vm4, %v1844_v60, %v634_v62  ;;  %v1851_v0 = vsel %vm635_vm4, %v634_v62, %v620_v61 }
 0x30c   :  { %v1853_v1 = vpop.permute.xlu1 %690 }
 0x310   :  { %v679_v2 = vpop.permute.xlu1 %678 }
 0x311   :  { %v1884_v24 = vsel %vm132_vm5, %v679_v2, %v1874_v18 }
 0x314   :  { %v693_v3 = vpop.permute.xlu1 %692 }
 0x315   :  { %v1857_v4 = vsel %vm132_vm5, %v1853_v1, %v693_v3  ;;  %v1860_v7 = vsel %vm132_vm5, %v693_v3, %v679_v2  ;;  %v541_v2 = vrot.slane %v1994_v57, %v1713_v5  ;;  %v2002_v3 = vld [vmem:[#allocation8] sm:$0xff] }
 0x318   :  { %v747_v12 = vpop.permute.xlu1 %746 }
 0x319   :  { %v1890_v28 = vsel %vm141_vm6, %v745_v26, %v747_v12 }
 0x31c   :  { %v743_v13 = vpop.permute.xlu1 %742 }
 0x31d   :  { %v1887_v27 = vsel %vm141_vm6, %v743_v13, %v745_v26  ;;  %v537_v26 = vrot.slane %v2002_v3, %v1713_v5 }
 0x31e   :  { %2238 = vst [vmem:[#allocation17_spill] sm:$0xff] %v1887_v27 }
 0x31f   :  { %v554_v23 = vmul.f32 %v537_v26, %v1827_v52 }
 0x320   :  { %v749_v17 = vpop.permute.xlu1 %748 }
 0x321   :  { %v1877_v21 = vsel %vm141_vm6, %v747_v12, %v749_v17  ;;  %v1880_v22 = vsel %vm141_vm6, %v749_v17, %v743_v13  ;;  %v2004_v12 = vld [vmem:[#allocation8 + $0x18] sm:$0xff]  ;;  %v2006_v13 = vld [vmem:[#allocation8 + $0x10] sm:$0xff] }
 0x322   :  { %v545_v46 = vrot.slane %v2006_v13, %v1713_v5 }
 0x324   :  { %v805_v25 = vpop.permute.xlu1 %804 }
 0x325   :  { %v1896_v32 = vsel %vm808_vm7, %v803_v30, %v805_v25 }
 0x326   :  { %2240 = vst [vmem:[#allocation19_spill] sm:$0xff] %v1896_v32 }
 0x328   :  { %v801_v29 = vpop.permute.xlu1 %800 }
 0x329   :  { %v1893_v31 = vsel %vm808_vm7, %v801_v29, %v803_v30  ;;  %v555_v30 = vmul.f32 %v541_v2, %v1824_v50 }
 0x32a   :  { %2239 = vst [vmem:[#allocation18_spill] sm:$0xff] %v1893_v31 }
 0x32c   :  { %v807_v33 = vpop.permute.xlu1 %806 }
 0x32d   :  { %v1899_v38 = vsel %vm808_vm7, %v805_v25, %v807_v33  ;;  %v1902_v39 = vsel %vm808_vm7, %v807_v33, %v801_v29  ;;  %v549_v33 = vrot.slane %v2004_v12, %v1713_v5  ;;  %v556_v5 = vmul.f32 %v545_v46, %v1830_v54 }
 0x32e   :  { %2241 = vst [vmem:[#allocation20_spill] sm:$0xff] %v1899_v38  ;;  %2242 = vst [vmem:[#allocation21_spill] sm:$0xff] %v1902_v39 }
 0x32f   :  { %v557_v31 = vmul.f32 %v549_v33, %v1833_v20 }
 0x330   :  { %v1982_v45 = vpop.permute.xlu1 %863 }
 0x331   :  { %2243 = vst [vmem:[#allocation22_spill] sm:$0xff] %v1982_v45 }
 0x3c7   :  { %v1904_v40 = vpop.f32.mrb[0].mxu1  ;;  %v1906_v41 = vpop.f32.mrb[2].mxu0 }
 0x3c8   :  { %505 = vrot.lane.b32.xlu1 %v1904_v40, %s1570_s13  ;;  %v1910_v42 = vpop.f32.mrb[1].mxu1  ;;  %509 = vrot.lane.b32.xlu0 %v1906_v41, %s1570_s13  ;;  %v1914_v43 = vpop.f32.mrb[3].mxu0 }
 0x3cc   :  { %738 = vrot.lane.b32.xlu1 %v1906_v41, %s1563_s24  ;;  %564 = vrot.lane.b32.xlu0 %v1904_v40, %s1571_s14 }
 0x3d0   :  { %796 = vrot.lane.b32.xlu1 %v1906_v41, %s1573_s19  ;;  %568 = vrot.lane.b32.xlu0 %v1906_v41, %s1571_s14 }
 0x3d4   :  { %855 = vrot.lane.b32.xlu1 %v1906_v41, %s1574_s21  ;;  %623 = vrot.lane.b32.xlu0 %v1904_v40, %s1572_s20 }
 0x3d8   :  { %507 = vrot.lane.b32.xlu1 %v1910_v42, %s1570_s13  ;;  %627 = vrot.lane.b32.xlu0 %v1906_v41, %s1572_s20 }
 0x3dc   :  { %682 = vrot.lane.b32.xlu0 %v1904_v40, %s1561_s22  ;;  %493 = vrot.lane.b32.xlu1 %v1914_v43, %s1570_s13 }
 0x3e0   :  { %686 = vrot.lane.b32.xlu0 %v1906_v41, %s1561_s22  ;;  %566 = vrot.lane.b32.xlu1 %v1910_v42, %s1571_s14 }
 0x3e4   :  { %734 = vrot.lane.b32.xlu0 %v1904_v40, %s1563_s24  ;;  %625 = vrot.lane.b32.xlu1 %v1910_v42, %s1572_s20 }
 0x3e8   :  { %792 = vrot.lane.b32.xlu0 %v1904_v40, %s1573_s19  ;;  %684 = vrot.lane.b32.xlu1 %v1910_v42, %s1561_s22 }
 0x3ec   :  { %851 = vrot.lane.b32.xlu0 %v1904_v40, %s1574_s21  ;;  %859 = vrot.lane.b32.xlu1 %v1753_v34, %s1574_s21 }
 0x3f0   :  { %558 = vrot.lane.b32.xlu0 %v1914_v43, %s1571_s14  ;;  %865 = vrot.lane.b32.xlu1 %v1771_v36, %s1574_s21 }
 0x3f4   :  { %617 = vrot.lane.b32.xlu0 %v1914_v43, %s1572_s20  ;;  %914 = vrot.lane.b32.xlu1 %v1906_v41, %s1575_s1 }
 0x3f8   :  { %920 = vrot.lane.b32.xlu0 %v1762_v35, %s1575_s1  ;;  %922 = vrot.lane.b32.xlu1 %v1780_v37, %s1575_s1 }
 0x3fc   :  { %910 = vrot.lane.b32.xlu0 %v1904_v40, %s1575_s1  ;;  %918 = vrot.lane.b32.xlu1 %v1753_v34, %s1575_s1 }
 0x400   :  { %676 = vrot.lane.b32.xlu0 %v1914_v43, %s1561_s22  ;;  %924 = vrot.lane.b32.xlu1 %v1771_v36, %s1575_s1 }
 0x404   :  { %736 = vrot.lane.b32.xlu0 %v1910_v42, %s1563_s24 }
 0x408   :  { %740 = vrot.lane.b32.xlu0 %v1914_v43, %s1563_s24 }
 0x40c   :  { %794 = vrot.lane.b32.xlu0 %v1910_v42, %s1573_s19 }
 0x410   :  { %798 = vrot.lane.b32.xlu0 %v1914_v43, %s1573_s19 }
 0x414   :  { %853 = vrot.lane.b32.xlu0 %v1910_v42, %s1574_s21 }
 0x418   :  { %857 = vrot.lane.b32.xlu0 %v1914_v43, %s1574_s21 }
 0x41c   :  { %912 = vrot.lane.b32.xlu0 %v1910_v42, %s1575_s1 }
 0x420   :  { %916 = vrot.lane.b32.xlu0 %v1914_v43, %s1575_s1 }
 0x43a   :  { %v506_v47 = vpop.permute.xlu1 %505  ;;  %v510_v48 = vpop.permute.xlu0 %509 }
 0x43e   :  { %v1986_v49 = vpop.permute.xlu1 %738  ;;  %v1988_v51 = vpop.permute.xlu0 %564 }
 0x442   :  { %v1990_v53 = vpop.permute.xlu1 %796  ;;  %v1992_v56 = vpop.permute.xlu0 %568 }
 0x443   :  { %2245 = vst [vmem:[#allocation24_spill] sm:$0xff] %v1990_v53 }
 0x446   :  { %v1996_v61 = vpop.permute.xlu1 %855  ;;  %v1998_v62 = vpop.permute.xlu0 %623 }
 0x447   :  { %2246 = vst [vmem:[#allocation25_spill] sm:$0xff] %v1996_v61 }
 0x44a   :  { %v508_v17 = vpop.permute.xlu1 %507  ;;  %v2008_v25 = vpop.permute.xlu0 %627 }
 0x44b   :  { %v518_v29 = vsel %vm517_vm2, %v506_v47, %v508_v17  ;;  %v519_v44 = vsel %vm517_vm2, %v508_v17, %v510_v48  ;;  %v600_v17 = vrot.slane %v1994_v57, %v1715_v6 }
 0x44c   :  { %v551_v61 = vmul.f32 %v541_v2, %v518_v29  ;;  %v552_v32 = vmul.f32 %v545_v46, %v519_v44 }
 0x44e   :  { %v2019_v45 = vpop.permute.xlu0 %682  ;;  %v494_v39 = vpop.permute.xlu1 %493  ;;  %v1306_v38 = vpack.c.bf16 %v555_v30, %v551_v61  ;;  %v580_v61 = vsel %vm576_vm3, %v1862_v10, %v1835_v55  ;;  %v604_v55 = vrot.slane %v2006_v13, %v1715_v6  ;;  %v608_v10 = vrot.slane %v2004_v12, %v1715_v6 }
 0x44f   :  { %v520_v53 = vsel %vm517_vm2, %v510_v48, %v494_v39  ;;  %v532_v50 = vsel %vm517_vm2, %v494_v39, %v506_v47  ;;  %v1344_v39 = vpack.c.bf16 %v556_v5, %v552_v32  ;;  %v614_v47 = vmul.f32 %v600_v17, %v580_v61 }
 0x450   :  { %v550_v2 = vmul.f32 %v537_v26, %v532_v50  ;;  %v553_v29 = vmul.f32 %v549_v33, %v520_v53  ;;  %1307 = vmatprep.subr.bf16.mxu1 %v1306_v38  ;;  %v615_v26 = vmul.f32 %v604_v55, %v1839_v58  ;;  %v616_v33 = vmul.f32 %v608_v10, %v1842_v59 }
 0x451   :  { %v667_v50 = vrot.slane %v2004_v12, %v1720_v8  ;;  %v639_v5 = vsel %vm635_vm4, %v1868_v15, %v1844_v60 }
 0x452   :  { %v1308_v52 = vpack.c.bf16 %v554_v23, %v550_v2  ;;  %v2031_v30 = vpop.permute.xlu0 %686  ;;  %v567_v48 = vpop.permute.xlu1 %566  ;;  %v1342_v44 = vpack.c.bf16 %v557_v31, %v553_v29  ;;  %v596_v31 = vrot.slane %v2002_v3, %v1715_v6  ;;  %v663_v6 = vrot.slane %v2006_v13, %v1720_v8 }
 0x453   :  { %v577_v20 = vsel %vm576_vm3, %v1988_v51, %v567_v48  ;;  %v578_v53 = vsel %vm576_vm3, %v567_v48, %v1992_v56  ;;  %v675_v15 = vmul.f32 %v667_v50, %v1851_v0 }
 0x454   :  { %v610_v27 = vmul.f32 %v600_v17, %v577_v20  ;;  %1309 = vmatpush1.bf16.msra.mxu1 %v1308_v52  ;;  %1343 = vmatprep.subr.bf16.mxu0 %v1342_v44  ;;  %v659_v17 = vrot.slane %v1994_v57, %v1720_v8  ;;  %v613_v29 = vmul.f32 %v596_v31, %v1866_v11 }
 0x455   :  { %1345 = vmatpush1.bf16.msra.mxu0 %v1344_v39  ;;  %v611_v61 = vmul.f32 %v604_v55, %v578_v53  ;;  %v655_v39 = vrot.slane %v2002_v3, %v1720_v8 }
 0x456   :  { %v2035_v38 = vpop.permute.xlu0 %734  ;;  %v1310_v54 = vpack.c.bf16 %v614_v47, %v610_v27  ;;  %v626_v23 = vpop.permute.xlu1 %625  ;;  %v673_v47 = vmul.f32 %v659_v17, %v639_v5 }
 0x457   :  { %v636_v27 = vsel %vm635_vm4, %v1998_v62, %v626_v23  ;;  %v637_v59 = vsel %vm635_vm4, %v626_v23, %v2008_v25  ;;  %v1348_v23 = vpack.c.bf16 %v615_v26, %v611_v61 }
 0x458   :  { %1311 = vmatprep.subr.bf16.mxu1 %v1310_v54  ;;  %v669_v52 = vmul.f32 %v659_v17, %v636_v27  ;;  %v717_v54 = vrot.slane %v1994_v57, %v1722_v9  ;;  %v672_v17 = vmul.f32 %v655_v39, %v1872_v16 }
 0x45a   :  { %v2037_v46 = vpop.permute.xlu0 %792  ;;  %v685_v2 = vpop.permute.xlu1 %684 }
 0x45b   :  { %v694_v11 = vsel %vm132_vm5, %v2019_v45, %v685_v2 }
 0x45c   :  { %v727_v27 = vmul.f32 %v717_v54, %v694_v11 }
 0x45e   :  { %v2045_v32 = vpop.permute.xlu0 %851 }
 0x462   :  { %v559_v58 = vpop.permute.xlu0 %558 }
 0x463   :  { %v579_v48 = vsel %vm576_vm3, %v1992_v56, %v559_v58  ;;  %v591_v44 = vsel %vm576_vm3, %v559_v58, %v1988_v51  ;;  %v697_v56 = vsel %vm132_vm5, %v1874_v18, %v1853_v1  ;;  %v670_v51 = vmul.f32 %v663_v6, %v637_v59  ;;  %v2097_v59 = vpop.permute.xlu1 %859 }
 0x464   :  { %v609_v20 = vmul.f32 %v596_v31, %v591_v44  ;;  %v612_v60 = vmul.f32 %v608_v10, %v579_v48  ;;  %v1314_v10 = vpack.c.bf16 %v673_v47, %v669_v52  ;;  %v674_v1 = vmul.f32 %v663_v6, %v1848_v63 }
 0x465   :  { %v731_v18 = vmul.f32 %v717_v54, %v697_v56  ;;  %v713_v63 = vrot.slane %v2002_v3, %v1722_v9  ;;  %v721_v6 = vrot.slane %v2006_v13, %v1722_v9  ;;  %v779_v47 = vrot.slane %v2006_v13, %v1726_v14 }
 0x466   :  { %v1312_v55 = vpack.c.bf16 %v613_v29, %v609_v20  ;;  %v618_v53 = vpop.permute.xlu0 %617  ;;  %v1346_v8 = vpack.c.bf16 %v616_v33, %v612_v60 }
 0x467   :  { %v638_v31 = vsel %vm635_vm4, %v2008_v25, %v618_v53  ;;  %v650_v0 = vsel %vm635_vm4, %v618_v53, %v1998_v62  ;;  %v1352_v25 = vpack.c.bf16 %v674_v1, %v670_v51  ;;  %v1318_v61 = vpack.c.bf16 %v731_v18, %v727_v27  ;;  %v2121_v53 = vpop.permute.xlu1 %865 }
 0x468   :  { %v668_v5 = vmul.f32 %v655_v39, %v650_v0  ;;  %v671_v58 = vmul.f32 %v667_v50, %v638_v31  ;;  %1313 = vmatpush1.bf16.msra.mxu1 %v1312_v55  ;;  %1347 = vmatprep.subr.bf16.mxu0 %v1346_v8  ;;  %v725_v62 = vrot.slane %v2004_v12, %v1722_v9 }
 0x469   :  { %1315 = vmatprep.subr.bf16.mxu1 %v1314_v10  ;;  %1349 = vmatpush1.bf16.msra.mxu0 %v1348_v23  ;;  %v695_v50 = vsel %vm132_vm5, %v685_v2, %v2031_v30  ;;  %v730_v20 = vmul.f32 %v713_v63, %v1884_v24  ;;  %v775_v2 = vrot.slane %v1994_v57, %v1726_v14 }
 0x46a   :  { %v1316_v26 = vpack.c.bf16 %v672_v17, %v668_v5  ;;  %v2085_v33 = vpop.permute.xlu0 %920  ;;  %v1350_v29 = vpack.c.bf16 %v675_v15, %v671_v58  ;;  %v733_v48 = vmul.f32 %v725_v62, %v1860_v7  ;;  %v728_v44 = vmul.f32 %v721_v6, %v695_v50  ;;  %v2247_v58 = vld [vmem:[#allocation17_spill] sm:$0xff] }
 0x46b   :  { %v732_v9 = vmul.f32 %v721_v6, %v1857_v4  ;;  %v783_v7 = vrot.slane %v2004_v12, %v1726_v14  ;;  %v1322_v4 = vpack.c.bf16 %v1762_v35, %v1910_v42  ;;  %v789_v55 = vmul.f32 %v775_v2, %v1890_v28 }
 0x46c   :  { %1317 = vmatpush1.bf16.msra.mxu1 %v1316_v26  ;;  %1351 = vmatprep.subr.bf16.mxu0 %v1350_v29  ;;  %v830_v27 = vrot.slane %v2002_v3, %v1730_v19  ;;  %v834_v31 = vrot.slane %v1994_v57, %v1730_v19  ;;  %v1324_v28 = vpack.c.bf16 %v1753_v34, %v1904_v40 }
 0x46d   :  { %1319 = vmatprep.subr.bf16.mxu1 %v1318_v61  ;;  %1353 = vmatpush1.bf16.msra.mxu0 %v1352_v25  ;;  %v1356_v24 = vpack.c.bf16 %v732_v9, %v728_v44  ;;  %v790_v10 = vmul.f32 %v779_v47, %v1877_v21  ;;  %v1360_v17 = vpack.c.bf16 %v1780_v37, %v1906_v41  ;;  %v2142_v21 = vpop.permute.xlu1 %914  ;;  %v2249_v61 = vld [vmem:[#allocation24_spill] sm:$0xff] }
 0x46e   :  { %v2087_v16 = vpop.permute.xlu0 %910  ;;  %v791_v5 = vmul.f32 %v783_v7, %v1880_v22  ;;  %v838_v34 = vrot.slane %v2006_v13, %v1730_v19  ;;  %v842_v37 = vrot.slane %v2004_v12, %v1730_v19  ;;  %v2248_v22 = vld [vmem:[#allocation18_spill] sm:$0xff] }
 0x46f   :  { %v847_v41 = vmul.f32 %v830_v27, %v2248_v22 }
 0x472   :  { %v677_v52 = vpop.permute.xlu0 %676 }
 0x473   :  { %v696_v39 = vsel %vm132_vm5, %v2031_v30, %v677_v52  ;;  %v708_v11 = vsel %vm132_vm5, %v677_v52, %v2019_v45  ;;  %v771_v30 = vrot.slane %v2002_v3, %v1726_v14  ;;  %v1358_v14 = vpack.c.bf16 %v1771_v36, %v1914_v43 }
 0x474   :  { %v726_v60 = vmul.f32 %v713_v63, %v708_v11  ;;  %v729_v15 = vmul.f32 %v725_v62, %v696_v39  ;;  %v2250_v63 = vld [vmem:[#allocation19_spill] sm:$0xff] }
 0x475   :  { %v788_v1 = vmul.f32 %v771_v30, %v2247_v58  ;;  %v848_v50 = vmul.f32 %v834_v31, %v2250_v63  ;;  %v1195_v63 = vld [vmem:[#allocation8 + $0x30] ss:$0 sm:$0xff] }
 0x476   :  { %v1320_v54 = vpack.c.bf16 %v730_v20, %v726_v60  ;;  %v737_v45 = vpop.permute.xlu0 %736  ;;  %v1354_v56 = vpack.c.bf16 %v733_v48, %v729_v15  ;;  %v2251_v48 = vld [vmem:[#allocation16_spill] sm:$0xff]  ;;  %v2253_v60 = vld [vmem:[#allocation21_spill] sm:$0xff] }
 0x477   :  { %v750_v23 = vsel %vm141_vm6, %v2035_v38, %v737_v45  ;;  %v751_v51 = vsel %vm141_vm6, %v737_v45, %v1986_v49  ;;  %v893_v44 = vrot.slane %v1994_v57, %v2251_v48  ;;  %v2252_v20 = vld [vmem:[#allocation20_spill] sm:$0xff]  ;;  %v850_v15 = vmul.f32 %v842_v37, %v2253_v60  ;;  %v923_v45 = vpop.permute.xlu1 %922 }
 0x478   :  { %v785_v8 = vmul.f32 %v775_v2, %v751_v51  ;;  %1321 = vmatpush1.bf16.msra.mxu1 %v1320_v54  ;;  %1355 = vmatprep.subr.bf16.mxu0 %v1354_v56  ;;  %v784_v0 = vmul.f32 %v771_v30, %v750_v23  ;;  %v849_v2 = vmul.f32 %v838_v34, %v2252_v20  ;;  %v2255_v30 = vld [vmem:[#allocation23_spill] sm:$0xff] }
 0x479   :  { %1323 = vmatprep.subr.bf16.mxu1 %v1322_v4  ;;  %1357 = vmatpush1.bf16.msra.mxu0 %v1356_v24  ;;  %v889_v57 = vrot.slane %v2002_v3, %v2251_v48  ;;  %v871_v23 = vsel %vm867_vm8, %v2097_v59, %v2255_v30  ;;  %v2256_v3 = vld [vmem:[#allocation25_spill] sm:$0xff] }
 0x47a   :  { %v741_v35 = vpop.permute.xlu0 %740  ;;  %1359 = vmatprep.subr.bf16.mxu0 %v1358_v14  ;;  %v1326_v42 = vpack.c.bf16 %v789_v55, %v785_v8  ;;  %v1328_v40 = vpack.c.bf16 %v788_v1, %v784_v0  ;;  %v897_v8 = vrot.slane %v2006_v13, %v2251_v48  ;;  %v901_v0 = vrot.slane %v2004_v12, %v2251_v48 }
 0x47b   :  { %v752_v36 = vsel %vm141_vm6, %v1986_v49, %v741_v35  ;;  %v766_v43 = vsel %vm141_vm6, %v741_v35, %v2035_v38  ;;  %v885_v13 = vsel %vm867_vm8, %v2121_v53, %v2097_v59  ;;  %v931_v59 = vsel %vm926_vm9, %v2085_v33, %v923_v45 }
 0x47c   :  { %v786_v18 = vmul.f32 %v779_v47, %v752_v36  ;;  %v787_v26 = vmul.f32 %v783_v7, %v766_v43  ;;  %1325 = vmatpush1.bf16.msra.mxu1 %v1324_v28  ;;  %v2254_v7 = vld [vmem:[#allocation22_spill] sm:$0xff]  ;;  %v909_v1 = vmul.f32 %v901_v0, %v885_v13 }
 0x47d   :  { %1327 = vmatprep.subr.bf16.mxu1 %v1326_v42  ;;  %1361 = vmatpush1.bf16.msra.mxu0 %v1360_v17  ;;  %v872_v54 = vsel %vm867_vm8, %v2255_v30, %v2254_v7  ;;  %v873_v42 = vsel %vm867_vm8, %v2254_v7, %v2121_v53  ;;  %v1193_v53 = vld [vmem:[#allocation8 + $0x20] ss:$0 sm:$0xff] }
 0x47e   :  { %v1364_v49 = vpack.c.bf16 %v790_v10, %v786_v18  ;;  %v795_v38 = vpop.permute.xlu0 %794  ;;  %v1362_v29 = vpack.c.bf16 %v791_v5, %v787_v26  ;;  %v919_v10 = vpop.permute.xlu1 %918  ;;  %v908_v58 = vmul.f32 %v897_v8, %v873_v42 }
 0x47f   :  { %v809_v25 = vsel %vm808_vm7, %v2037_v46, %v795_v38  ;;  %v810_v62 = vsel %vm808_vm7, %v795_v38, %v2249_v61 }
 0x480   :  { %v843_v6 = vmul.f32 %v830_v27, %v809_v25  ;;  %v844_v52 = vmul.f32 %v834_v31, %v810_v62  ;;  %1329 = vmatpush1.bf16.msra.mxu1 %v1328_v40  ;;  %1363 = vmatprep.subr.bf16.mxu0 %v1362_v29  ;;  %v906_v31 = vmul.f32 %v889_v57, %v871_v23 }
 0x481   :  { %1365 = vmatpush1.bf16.msra.mxu0 %v1364_v49  ;;  %v930_v40 = vsel %vm926_vm9, %v919_v10, %v2085_v33 }
 0x482   :  { %v1332_v19 = vpack.c.bf16 %v847_v41, %v843_v6  ;;  %v799_v39 = vpop.permute.xlu0 %798  ;;  %v1330_v11 = vpack.c.bf16 %v848_v50, %v844_v52  ;;  %v925_v38 = vpop.permute.xlu1 %924  ;;  %v965_v25 = vmul.f32 %v1193_v53, %v930_v40  ;;  %v1196_v50 = vld [vmem:[#allocation8 + $0x38] ss:$0 sm:$0xff] }
 0x483   :  { %v811_v9 = vsel %vm808_vm7, %v2249_v61, %v799_v39  ;;  %v825_v47 = vsel %vm808_vm7, %v799_v39, %v2037_v46  ;;  %v907_v46 = vmul.f32 %v893_v44, %v872_v54  ;;  %v932_v33 = vsel %vm926_vm9, %v923_v45, %v925_v38 }
 0x484   :  { %v845_v56 = vmul.f32 %v838_v34, %v811_v9  ;;  %v846_v24 = vmul.f32 %v842_v37, %v825_v47  ;;  %1331 = vmatprep.subr.bf16.mxu1 %v1330_v11  ;;  %v1194_v34 = vld [vmem:[#allocation8 + $0x28] ss:$0 sm:$0xff]  ;;  %v944_v6 = vsel %vm926_vm9, %v925_v38, %v919_v10  ;;  %v967_v11 = vmul.f32 %v1195_v63, %v932_v33 }
 0x485   :  { %1333 = vmatpush1.bf16.msra.mxu1 %v1332_v19  ;;  %v966_v41 = vmul.f32 %v1194_v34, %v931_v59  ;;  %v968_v20 = vmul.f32 %v1196_v50, %v944_v6 }
 0x486   :  { %v1368_v51 = vpack.c.bf16 %v849_v2, %v845_v56  ;;  %v854_v4 = vpop.permute.xlu0 %853  ;;  %v1366_v55 = vpack.c.bf16 %v850_v15, %v846_v24  ;;  %v969_v15 = vld [vmem:[#allocation7] sm:$0xff]  ;;  %v1116_v56 = vld [vmem:[%s2228_s9] sm:$0xff]  ;;  %s1576_s9 = smov [#allocation11]  }
 0x487   :  { %v868_v14 = vsel %vm867_vm8, %v2045_v32, %v854_v4  ;;  %v869_v27 = vsel %vm867_vm8, %v854_v4, %v2256_v3  ;;  %s1177_s2 = sshll.u32 %s1576_s9, 4  ;;  %s1178_s2 = int_to_ptr.vmem [resolvable:$true] %s1177_s2 }
 0x488   :  { %v902_v35 = vmul.f32 %v889_v57, %v868_v14  ;;  %v903_v28 = vmul.f32 %v893_v44, %v869_v27  ;;  %1367 = vmatprep.subr.bf16.mxu0 %v1366_v55  ;;  %p1526_p13 = scmp.lt.s32.totalorder %s1178_s2, %s1178_s2 }
 0x489   :  { %1369 = vmatpush1.bf16.msra.mxu0 %v1368_v51 }
 0x48a   :  { %v1336_v36 = vpack.c.bf16 %v906_v31, %v902_v35  ;;  %v858_v43 = vpop.permute.xlu0 %857  ;;  %v1334_v17 = vpack.c.bf16 %v907_v46, %v903_v28  ;;  %v1117_v28 = vld [vmem:[%s2229_s10] sm:$0xff]  ;;  %s1521_s10 = scalar_lea.vmem %s1178_s2, 512 }
 0x48b   :  { %v870_v12 = vsel %vm867_vm8, %v2256_v3, %v858_v43  ;;  %v884_v5 = vsel %vm867_vm8, %v858_v43, %v2045_v32  ;;  %p1522_p12 = scmp.ne.s32.totalorder %s1178_s2, %s1521_s10  ;;  %p1527_p0 = scmp.lt.s32.totalorder %s1521_s10, %s1521_s10 }
 0x48c   :  { %v904_v18 = vmul.f32 %v897_v8, %v870_v12  ;;  %v905_v26 = vmul.f32 %v901_v0, %v884_v5  ;;  %1335 = vmatprep.subr.bf16.mxu1 %v1334_v17 }
 0x48d   :  { %1337 = vmatpush1.bf16.msra.mxu1 %v1336_v36  ;;  %p1528_p1 = por %p1527_p0, %p1526_p13 }
 0x48e   :  { %v1372_v49 = vpack.c.bf16 %v908_v58, %v904_v18  ;;  %v913_v29 = vpop.permute.xlu0 %912  ;;  %v1370_v37 = vpack.c.bf16 %v909_v1, %v905_v26 }
 0x48f   :  { %v927_v32 = vsel %vm926_vm9, %v2087_v16, %v913_v29  ;;  %v928_v22 = vsel %vm926_vm9, %v913_v29, %v2142_v21  ;;  %p1529_p2 = pnand %p1528_p1, %p1522_p12 }
 0x490   :  { %v961_v61 = vmul.f32 %v1193_v53, %v927_v32  ;;  %v962_v62 = vmul.f32 %v1194_v34, %v928_v22  ;;  %1371 = vmatprep.subr.bf16.mxu0 %v1370_v37 }
 0x491   :  { %1373 = vmatpush1.bf16.msra.mxu0 %v1372_v49 }
 0x492   :  { %v1340_v52 = vpack.c.bf16 %v965_v25, %v961_v61  ;;  %v917_v48 = vpop.permute.xlu0 %916  ;;  %v1338_v44 = vpack.c.bf16 %v966_v41, %v962_v62 }
 0x493   :  { %v929_v19 = vsel %vm926_vm9, %v2142_v21, %v917_v48  ;;  %v943_v39 = vsel %vm926_vm9, %v917_v48, %v2087_v16 }
 0x494   :  { %v963_v2 = vmul.f32 %v1195_v63, %v929_v19  ;;  %v964_v60 = vmul.f32 %v1196_v50, %v943_v39  ;;  %1339 = vmatprep.subr.bf16.mxu1 %v1338_v44 }
 0x495   :  { %1341 = vmatpush1.bf16.msra.mxu1 %v1340_v52 }
 0x496   :  { %v1376_v9 = vpack.c.bf16 %v967_v11, %v963_v2  ;;  %v1374_v47 = vpack.c.bf16 %v968_v20, %v964_v60 }
 0x498   :  { %1039 = vmatmul.mubr.f32.vlgmr.msra.gmra.mrb[2].mxu1 %v969_v15  ;;  %1375 = vmatprep.subr.bf16.mxu0 %v1374_v47 }
 0x499   :  { %1377 = vmatpush1.bf16.msra.mxu0 %v1376_v9 }
 0x49c   :  { %1110 = vmatmul.mubr.f32.vlgmr.msra.gmra.mrb[4].mxu0 %v969_v15 }
 0x56b   :  { %v1040_v7 = vpop.f32.mrb[2].mxu1 }
 0x56c   :  { %v1042_v30 = vpop.f32.mrb[3].mxu1 }
 0x56d   :  { %v1118_v54 = vadd.f32 %v1042_v30, %v1040_v7 }
 0x56f   :  { %v1111_v21 = vpop.f32.mrb[4].mxu0 }
 0x570   :  { %v1119_v57 = vadd.f32 %v1118_v54, %v1111_v21  ;;  %v1113_v45 = vpop.f32.mrb[5].mxu0 }
 0x572   :  { %v1120_v16 = vadd.f32 %v1119_v57, %v1113_v45 }
 0x574   :  { %1121 = vadd.xlane.f32.xlu0 %v1120_v16 }
 0x58a   :  { %1147 = vperm.xlu0 %1405, %v1116_v56  }
 0x601   :  { %v1122_v24 = vpop.xlane.xlu0 %1121 }
 0x602   :  { %v1124_v23 = vmul.f32 0.001953125, %v1122_v24 }
 0x604   :  { %v1125_v51 = vsub.f32 %v1040_v7, %v1124_v23  ;;  %v1126_v4 = vsub.f32 %v1042_v30, %v1124_v23  ;;  %v1127_v55 = vsub.f32 %v1111_v21, %v1124_v23  ;;  %v1128_v46 = vsub.f32 %v1113_v45, %v1124_v23 }
 0x606   :  { %v1129_v8 = vmul.f32 %v1125_v51, %v1125_v51  ;;  %v1130_v14 = vmul.f32 %v1126_v4, %v1126_v4  ;;  %v1131_v3 = vmul.f32 %v1127_v55, %v1127_v55  ;;  %v1132_v31 = vmul.f32 %v1128_v46, %v1128_v46 }
 0x608   :  { %v1133_v27 = vadd.f32 %v1130_v14, %v1129_v8 }
 0x609   :  { %v1148_v58 = vpop.permute.xlu0 %1147 }
 0x60a   :  { %v1134_v0 = vadd.f32 %v1133_v27, %v1131_v3 }
 0x60c   :  { %v1135_v35 = vadd.f32 %v1134_v0, %v1132_v31 }
 0x60e   :  { %1136 = vadd.xlane.f32.xlu1 %v1135_v35 }
 0x61f   :  { %1156 = vperm.xlu1 %1406, %v1117_v28  }
 0x69b   :  { %v1137_v42 = vpop.xlane.xlu1 %1136 }
 0x69c   :  { %v1138_v13 = vmul.f32 0.001953125, %v1137_v42 }
 0x69e   :  { %v1139_v10 = vadd.f32 1e-05, %v1138_v13 }
 0x69f   :  { %v1157_v59 = vpop.permute.xlu1 %1156 }
 0x6a0   :  { %1409 = vrsqrt.f32 %v1139_v10 }
 0x6aa   :  { %v1410_v36 = vpop.eup %1409 }
 0x6ab   :  { %v1141_v43 = vmul.f32 %v1410_v36, %v1125_v51  ;;  %v1142_v17 = vmul.f32 %v1410_v36, %v1126_v4  ;;  %v1143_v12 = vmul.f32 %v1410_v36, %v1127_v55  ;;  %v1144_v5 = vmul.f32 %v1410_v36, %v1128_v46 }
 0x6ad   :  { %v1150_v1 = vmul.f32 %v1148_v58, %v1141_v43  ;;  %v1151_v18 = vmul.f32 %v1148_v58, %v1142_v17  ;;  %v1152_v26 = vmul.f32 %v1148_v58, %v1143_v12  ;;  %v1153_v34 = vmul.f32 %v1148_v58, %v1144_v5 }
 0x6af   :  { %v1159_v53 = vadd.f32 %v1157_v59, %v1150_v1  ;;  %v1160_v40 = vadd.f32 %v1157_v59, %v1151_v18  ;;  %v1161_v49 = vadd.f32 %v1157_v59, %v1152_v26  ;;  %v1162_v38 = vadd.f32 %v1157_v59, %v1153_v34 }
 0x6b1   :  { %v1163_v29 = vmax.f32 %v1159_v53, 0.0  ;;  %v1164_v37 = vmax.f32 %v1160_v40, 0.0  ;;  %v1165_v32 = vmax.f32 %v1161_v49, 0.0  ;;  %v1166_v22 = vmax.f32 %v1162_v38, 0.0 }
 0x6b3   :  { %1167 = vst [vmem:[#allocation11] sm:$0xff] %v1163_v29  ;;  %1168 = vst [vmem:[#allocation11 + $0x8] sm:$0xff] %v1164_v37 }
 0x6b4   :  { %1170 = vst [vmem:[#allocation11 + $0x10] sm:$0xff] %v1165_v32  ;;  %1171 = vst [vmem:[#allocation11 + $0x18] sm:$0xff] %v1166_v22 }
 0x6b5   :  { %1532 = shalt.err (!%p1529_p2)
}
 0x6b6   :  { %s1533_s28 = scalar_lea.hbm %s2230_s11, 512 }
 0x6b7   :  { %p1534_p3 = scmp.ne.s32.totalorder %s2230_s11, %s1533_s28  ;;  %p1537_p4 = scmp.lt.u32.totalorder %s1533_s28, %s2230_s11 }
 0x6b9   :  { %p1539_p5 = pnand %p1537_p4, %p1534_p3 }
 0x6bb   :  { %1542 = shalt.err (!%p1539_p5)
}
 0x6bc   :  { %s1577_s4 = smov 256  }
 0x6bd   :  { %1183 = dma.vmem_to_hbm [thread:$0]  %s1178_s2, 512, %s2230_s11, [#allocation4], %s1577_s4, %s1577_s4, %s1571_s14  }
 0x6be   :  { %1549 = dma.done.wait [#allocation4], 512  }
 0x6bf   :  { %1550 = vsyncadd [#allocation4], 4294966784 }
 0x6c0   :  { %1187 = vsyncpa [#allocation3], 1 }
 0x6c1   :  { %1188 = vsyncpa [#allocation6], 1 }
 0x6c2   :  { %1189 = vsyncpa [#allocation9], 1 }
 0x6c3   :  { %1190 = vsyncpa [#allocation4], 1 }

</bundles_post_ra>
